<compile_context>
chip_gen: v7x
topology: tpu7x:2x2x1
jax: 0.10.0
libtpu: 0.0.40
codegen_flags: <defaults>
</compile_context>

<pallas_src>
import functools

import jax
import jax.numpy as jnp
from jax.experimental import pallas as pl
from jax.experimental.pallas import tpu as pltpu

DIM = 40
INDIM = DIM + DIM // 2     # 60 (torch input width)
IN_PAD = 64                # zero-padded K for layer 1 (sublane / MXU friendly)
OUTDIM = DIM               # 40
H1 = 256
H2 = 1024
H3 = 512
OUT_PAD = 128              # lane-dense padded output width (multiple of 128)


def _round_up(n, m):
    return -(-n // m) * m


def _default_bf16_tanh():
    """bf16 tanh only where a bf16 EUP exists (v6e / v7x); f32 elsewhere."""
    try:
        kind = jax.devices()[0].device_kind.lower()
    except Exception:
        return False
    return ("v6" in kind) or ("v7" in kind)


def _mlp_kernel(x_ref,
                w1_ref, b1_ref,
                w2_ref, b2_ref,
                w3_ref, b3_ref,
                w4_ref, b4_ref,
                o_ref, *, bf16_tanh):
    # MXU matmuls: bf16 inputs, f32 accumulation. Bias adds in f32 on the VPU.
    def act(h):
        if bf16_tanh:
            # v6e/v7x: bf16 EUP is ~2x the f32 rate, and the result feeds a
            # bf16 matmul anyway.
            return jnp.tanh(h.astype(jnp.bfloat16))
        # v5e: no bf16 EUP -> tanh in f32, downcast only for the next dot.
        return jnp.tanh(h).astype(jnp.bfloat16)

    x = x_ref[...].astype(jnp.bfloat16)
    h = jnp.dot(x, w1_ref[...], preferred_element_type=jnp.float32) + b1_ref[...]
    h = act(h)
    h = jnp.dot(h, w2_ref[...], preferred_element_type=jnp.float32) + b2_ref[...]
    h = act(h)
    h = jnp.dot(h, w3_ref[...], preferred_element_type=jnp.float32) + b3_ref[...]
    h = act(h)
    out = jnp.dot(h, w4_ref[...], preferred_element_type=jnp.float32) + b4_ref[...]
    # (block_b, 128) f32 slab -> unmasked, full-lane stores.
    o_ref[...] = out


@functools.partial(jax.jit, static_argnames=("block_b", "bf16_tanh"))
def _generator_forward(x, kparams, *, block_b, bf16_tanh):
    B, indim = x.shape
    assert indim == INDIM

    B_pad = _round_up(B, block_b)
    # Pad batch to a tile multiple and K 60 -> 64 (w1 rows are zero-padded to
    # match in prepare_params, so the extra columns contribute nothing).
    x = jnp.pad(x, ((0, B_pad - B), (0, IN_PAD - INDIM)))

    w1, b1 = kparams["w1"], kparams["b1"]
    w2, b2 = kparams["w2"], kparams["b2"]
    w3, b3 = kparams["w3"], kparams["b3"]
    w4, b4 = kparams["w4"], kparams["b4"]

    def const_spec(shape):
        # Whole-array block, same block every grid step (stays VMEM-resident).
        return pl.BlockSpec(shape, lambda i: (0, 0))

    mac = IN_PAD * H1 + H1 * H2 + H2 * H3 + H3 * OUT_PAD
    cost = pl.CostEstimate(
        flops=2 * B_pad * mac,
        transcendentals=B_pad * (H1 + H2 + H3),
        bytes_accessed=2 * mac + 4 * (H1 + H2 + H3 + OUT_PAD)
        + B_pad * 4 * (IN_PAD + OUT_PAD),
    )

    # ~3.5 MB of double-buffered bf16 weights + ~24 KB/row of activations / IO,
    # with headroom for compiler-internal scratch.
    vmem_limit = int(min(100 * 2**20, 8 * 2**20 + block_b * 24 * 1024))

    kernel = functools.partial(_mlp_kernel, bf16_tanh=bf16_tanh)

    out_pad = pl.pallas_call(
        kernel,
        out_shape=jax.ShapeDtypeStruct((B_pad, OUT_PAD), jnp.float32),
        grid_spec=pltpu.PrefetchScalarGridSpec(
            num_scalar_prefetch=0,
            grid=(B_pad // block_b,),
            in_specs=[
                pl.BlockSpec((block_b, IN_PAD), lambda i: (i, 0)),   # x tile
                const_spec(w1.shape), const_spec(b1.shape),
                const_spec(w2.shape), const_spec(b2.shape),
                const_spec(w3.shape), const_spec(b3.shape),
                const_spec(w4.shape), const_spec(b4.shape),
            ],
            out_specs=pl.BlockSpec((block_b, OUT_PAD), lambda i: (i, 0)),
        ),
        compiler_params=pltpu.CompilerParams(
            dimension_semantics=("parallel",),
            vmem_limit_bytes=vmem_limit,
        ),
        cost_estimate=cost,
    )(x, w1, b1, w2, b2, w3, b3, w4, b4)

    return out_pad[:B, :OUTDIM]


def generator_forward(x, kparams, *, block_b=None, bf16_tanh=None):
    """x: (B, 60) f32. kparams: output of prepare_params(). Returns (B, 40) f32."""
    B = x.shape[0]
    if block_b is None:
        # Single grid step for small/medium batches (don't duplicate the
        # ~1.7 MB weight fetch across steps / v7x TensorCores); up to 512
        # rows/step for large B so per-step MXU work dwarfs the ~0.35 us/step
        # grid overhead.  Callers may sweep 256/512 explicitly.
        block_b = min(512, _round_up(B, 8))
    block_b = max(8, _round_up(int(block_b), 8))
    if bf16_tanh is None:
        bf16_tanh = _default_bf16_tanh()
    return _generator_forward(x, kparams, block_b=block_b, bf16_tanh=bool(bf16_tanh))


def init_params(key):
    """Deterministic init mimicking nn.Linear defaults: U(-1/sqrt(fan_in), +)."""
    dims = [(INDIM, H1), (H1, H2), (H2, H3), (H3, OUTDIM)]
    params = {}
    for li, (fan_in, fan_out) in enumerate(dims, start=1):
        key, kw, kb = jax.random.split(key, 3)
        bound = 1.0 / (fan_in ** 0.5)
        params[f"w{li}"] = jax.random.uniform(
            kw, (fan_in, fan_out), jnp.float32, -bound, bound)
        params[f"b{li}"] = jax.random.uniform(
            kb, (1, fan_out), jnp.float32, -bound, bound)
    return params


def prepare_params(params):
    """Kernel-ready params: bf16 weights, f32 biases, layer-1 K padded to 64,
    layer-4 output padded to 128 lanes (all padding is zeros -> exact)."""
    kp = {}
    for li in (1, 2, 3, 4):
        w = params[f"w{li}"]
        b = params[f"b{li}"]
        if li == 1:
            w = jnp.pad(w, ((0, IN_PAD - INDIM), (0, 0)))
        if li == 4:
            w = jnp.pad(w, ((0, 0), (0, OUT_PAD - OUTDIM)))
            b = jnp.pad(b, ((0, 0), (0, OUT_PAD - OUTDIM)))
        kp[f"w{li}"] = w.astype(jnp.bfloat16)
        kp[f"b{li}"] = b.astype(jnp.float32)
    return kp


def _reference(x, params):
    h = jnp.tanh(x @ params["w1"] + params["b1"])
    h = jnp.tanh(h @ params["w2"] + params["b2"])
    h = jnp.tanh(h @ params["w3"] + params["b3"])
    return h @ params["w4"] + params["b4"]


if __name__ == "__main__":
    key = jax.random.PRNGKey(0)
    kparam_key, kx = jax.random.split(key)
    params = init_params(kparam_key)
    kparams = prepare_params(params)

    # Small batch: default tiling -> a single grid step (no TC split of a
    # weight-DMA-bound problem).
    B = 16
    x = jax.random.normal(kx, (B, INDIM), jnp.float32)
    out = jax.block_until_ready(generator_forward(x, kparams))
    ref = _reference(x, params)
    assert out.shape == (B, OUTDIM)
    max_err = float(jnp.max(jnp.abs(out - ref)))
    # Looser tolerance: four chained bf16-input matmuls (+ bf16 tanh on
    # v6e/v7x) vs. the f32 reference.
    assert jnp.allclose(out, ref, atol=5e-2, rtol=5e-2), max_err

    # Ragged batch + explicit multi-step grid exercises the padding/tiling path.
    x2 = jax.random.normal(jax.random.fold_in(kx, 1), (132, INDIM), jnp.float32)
    out2 = jax.block_until_ready(generator_forward(x2, kparams, block_b=64))
    ref2 = _reference(x2, params)
    assert out2.shape == (132, OUTDIM)
    assert jnp.allclose(out2, ref2, atol=5e-2, rtol=5e-2)

    print("KERNEL_OK")
</pallas_src>

<mosaic_0001>
module attributes {stable_mosaic.version = 11 : i64} {
  func.func @_mlp_kernel(%arg0: i32, %arg1: memref<16x64xf32, #tpu.memory_space<vmem>>, %arg2: memref<64x256xbf16, #tpu.memory_space<vmem>>, %arg3: memref<1x256xf32, #tpu.memory_space<vmem>>, %arg4: memref<256x1024xbf16, #tpu.memory_space<vmem>>, %arg5: memref<1x1024xf32, #tpu.memory_space<vmem>>, %arg6: memref<1024x512xbf16, #tpu.memory_space<vmem>>, %arg7: memref<1x512xf32, #tpu.memory_space<vmem>>, %arg8: memref<512x128xbf16, #tpu.memory_space<vmem>>, %arg9: memref<1x128xf32, #tpu.memory_space<vmem>>, %arg10: memref<16x128xf32, #tpu.memory_space<vmem>>) attributes {dimension_semantics = [#tpu.dimension_semantics<parallel>], iteration_bounds = array<i64: 1>, scalar_prefetch = 0 : i64, scratch_operands = 0 : i64, tpu.core_type = #tpu.core_type<tc>, window_params = [{transform_indices = @transform_0, window_bounds = array<i64: 16, 64>}, {pipeline_mode = #tpu.pipeline_mode<synchronous>, transform_indices = @transform_1, window_bounds = array<i64: 64, 256>}, {pipeline_mode = #tpu.pipeline_mode<synchronous>, transform_indices = @transform_2, window_bounds = array<i64: 1, 256>}, {pipeline_mode = #tpu.pipeline_mode<synchronous>, transform_indices = @transform_3, window_bounds = array<i64: 256, 1024>}, {pipeline_mode = #tpu.pipeline_mode<synchronous>, transform_indices = @transform_4, window_bounds = array<i64: 1, 1024>}, {pipeline_mode = #tpu.pipeline_mode<synchronous>, transform_indices = @transform_5, window_bounds = array<i64: 1024, 512>}, {pipeline_mode = #tpu.pipeline_mode<synchronous>, transform_indices = @transform_6, window_bounds = array<i64: 1, 512>}, {pipeline_mode = #tpu.pipeline_mode<synchronous>, transform_indices = @transform_7, window_bounds = array<i64: 512, 128>}, {pipeline_mode = #tpu.pipeline_mode<synchronous>, transform_indices = @transform_8, window_bounds = array<i64: 1, 128>}, {transform_indices = @transform_9, window_bounds = array<i64: 16, 128>}]} {
    %c0 = arith.constant 0 : index
    %c0_0 = arith.constant 0 : index
    %0 = vector.load %arg1[%c0, %c0_0] : memref<16x64xf32, #tpu.memory_space<vmem>>, vector<16x64xf32>
    %1 = arith.truncf %0 : vector<16x64xf32> to vector<16x64xbf16>
    %c0_1 = arith.constant 0 : index
    %c0_2 = arith.constant 0 : index
    %2 = vector.load %arg2[%c0_1, %c0_2] : memref<64x256xbf16, #tpu.memory_space<vmem>>, vector<64x256xbf16>
    %cst = arith.constant dense<0.000000e+00> : vector<16x256xf32>
    %3 = tpu.matmul %1, %2, %cst {dimension_numbers = #tpu.dot_dimension_numbers<[1], [0], [0], [1], [0, 0, 1, 1], [], []>} : vector<16x64xbf16>, vector<64x256xbf16>, vector<16x256xf32> -> vector<16x256xf32>
    %c0_3 = arith.constant 0 : index
    %c0_4 = arith.constant 0 : index
    %4 = vector.load %arg3[%c0_3, %c0_4] : memref<1x256xf32, #tpu.memory_space<vmem>>, vector<1x256xf32>
    %5 = vector.broadcast %4 : vector<1x256xf32> to vector<16x256xf32>
    %6 = arith.addf %3, %5 : vector<16x256xf32>
    %7 = math.tanh %6 : vector<16x256xf32>
    %8 = arith.truncf %7 : vector<16x256xf32> to vector<16x256xbf16>
    %c0_5 = arith.constant 0 : index
    %c0_6 = arith.constant 0 : index
    %9 = vector.load %arg4[%c0_5, %c0_6] : memref<256x1024xbf16, #tpu.memory_space<vmem>>, vector<256x1024xbf16>
    %cst_7 = arith.constant dense<0.000000e+00> : vector<16x1024xf32>
    %10 = tpu.matmul %8, %9, %cst_7 {dimension_numbers = #tpu.dot_dimension_numbers<[1], [0], [0], [1], [0, 0, 1, 1], [], []>} : vector<16x256xbf16>, vector<256x1024xbf16>, vector<16x1024xf32> -> vector<16x1024xf32>
    %c0_8 = arith.constant 0 : index
    %c0_9 = arith.constant 0 : index
    %11 = vector.load %arg5[%c0_8, %c0_9] : memref<1x1024xf32, #tpu.memory_space<vmem>>, vector<1x1024xf32>
    %12 = vector.broadcast %11 : vector<1x1024xf32> to vector<16x1024xf32>
    %13 = arith.addf %10, %12 : vector<16x1024xf32>
    %14 = math.tanh %13 : vector<16x1024xf32>
    %15 = arith.truncf %14 : vector<16x1024xf32> to vector<16x1024xbf16>
    %c0_10 = arith.constant 0 : index
    %c0_11 = arith.constant 0 : index
    %16 = vector.load %arg6[%c0_10, %c0_11] : memref<1024x512xbf16, #tpu.memory_space<vmem>>, vector<1024x512xbf16>
    %cst_12 = arith.constant dense<0.000000e+00> : vector<16x512xf32>
    %17 = tpu.matmul %15, %16, %cst_12 {dimension_numbers = #tpu.dot_dimension_numbers<[1], [0], [0], [1], [0, 0, 1, 1], [], []>} : vector<16x1024xbf16>, vector<1024x512xbf16>, vector<16x512xf32> -> vector<16x512xf32>
    %c0_13 = arith.constant 0 : index
    %c0_14 = arith.constant 0 : index
    %18 = vector.load %arg7[%c0_13, %c0_14] : memref<1x512xf32, #tpu.memory_space<vmem>>, vector<1x512xf32>
    %19 = vector.broadcast %18 : vector<1x512xf32> to vector<16x512xf32>
    %20 = arith.addf %17, %19 : vector<16x512xf32>
    %21 = math.tanh %20 : vector<16x512xf32>
    %22 = arith.truncf %21 : vector<16x512xf32> to vector<16x512xbf16>
    %c0_15 = arith.constant 0 : index
    %c0_16 = arith.constant 0 : index
    %23 = vector.load %arg8[%c0_15, %c0_16] : memref<512x128xbf16, #tpu.memory_space<vmem>>, vector<512x128xbf16>
    %cst_17 = arith.constant dense<0.000000e+00> : vector<16x128xf32>
    %24 = tpu.matmul %22, %23, %cst_17 {dimension_numbers = #tpu.dot_dimension_numbers<[1], [0], [0], [1], [0, 0, 1, 1], [], []>} : vector<16x512xbf16>, vector<512x128xbf16>, vector<16x128xf32> -> vector<16x128xf32>
    %c0_18 = arith.constant 0 : index
    %c0_19 = arith.constant 0 : index
    %25 = vector.load %arg9[%c0_18, %c0_19] : memref<1x128xf32, #tpu.memory_space<vmem>>, vector<1x128xf32>
    %26 = vector.broadcast %25 : vector<1x128xf32> to vector<16x128xf32>
    %27 = arith.addf %24, %26 : vector<16x128xf32>
    %c0_20 = arith.constant 0 : index
    %c0_21 = arith.constant 0 : index
    %28 = vector.load %arg10[%c0_20, %c0_21] : memref<16x128xf32, #tpu.memory_space<vmem>>, vector<16x128xf32>
    tpu.vector_store %arg10[%c0_20, %c0_21], %27 {strides = array<i32>} : memref<16x128xf32, #tpu.memory_space<vmem>>, vector<16x128xf32>,
    return
  }
  func.func @transform_0(%arg0: i32) -> (i32, i32) {
    %c0_i32 = arith.constant 0 : i32
    %c0_i32_0 = arith.constant 0 : i32
    return %arg0, %c0_i32 : i32, i32
  }
  func.func @transform_1(%arg0: i32) -> (i32, i32) {
    %c0_i32 = arith.constant 0 : i32
    %c0_i32_0 = arith.constant 0 : i32
    %c0_i32_1 = arith.constant 0 : i32
    return %c0_i32, %c0_i32_0 : i32, i32
  }
  func.func @transform_2(%arg0: i32) -> (i32, i32) {
    %c0_i32 = arith.constant 0 : i32
    %c0_i32_0 = arith.constant 0 : i32
    %c0_i32_1 = arith.constant 0 : i32
    return %c0_i32, %c0_i32_0 : i32, i32
  }
  func.func @transform_3(%arg0: i32) -> (i32, i32) {
    %c0_i32 = arith.constant 0 : i32
    %c0_i32_0 = arith.constant 0 : i32
    %c0_i32_1 = arith.constant 0 : i32
    return %c0_i32, %c0_i32_0 : i32, i32
  }
  func.func @transform_4(%arg0: i32) -> (i32, i32) {
    %c0_i32 = arith.constant 0 : i32
    %c0_i32_0 = arith.constant 0 : i32
    %c0_i32_1 = arith.constant 0 : i32
    return %c0_i32, %c0_i32_0 : i32, i32
  }
  func.func @transform_5(%arg0: i32) -> (i32, i32) {
    %c0_i32 = arith.constant 0 : i32
    %c0_i32_0 = arith.constant 0 : i32
    %c0_i32_1 = arith.constant 0 : i32
    return %c0_i32, %c0_i32_0 : i32, i32
  }
  func.func @transform_6(%arg0: i32) -> (i32, i32) {
    %c0_i32 = arith.constant 0 : i32
    %c0_i32_0 = arith.constant 0 : i32
    %c0_i32_1 = arith.constant 0 : i32
    return %c0_i32, %c0_i32_0 : i32, i32
  }
  func.func @transform_7(%arg0: i32) -> (i32, i32) {
    %c0_i32 = arith.constant 0 : i32
    %c0_i32_0 = arith.constant 0 : i32
    %c0_i32_1 = arith.constant 0 : i32
    return %c0_i32, %c0_i32_0 : i32, i32
  }
  func.func @transform_8(%arg0: i32) -> (i32, i32) {
    %c0_i32 = arith.constant 0 : i32
    %c0_i32_0 = arith.constant 0 : i32
    %c0_i32_1 = arith.constant 0 : i32
    return %c0_i32, %c0_i32_0 : i32, i32
  }
  func.func @transform_9(%arg0: i32) -> (i32, i32) {
    %c0_i32 = arith.constant 0 : i32
    %c0_i32_0 = arith.constant 0 : i32
    return %arg0, %c0_i32 : i32, i32
  }
}

</mosaic_0001>

<bundles_post_ra>
// kernel: _generator_forward.1
= control target key start
LH: loop header
LB: loop body
LE: loop exit
PB: predicated region body
PF: predicated region fallthrough
CT: control target
= control target key end

     0   :  { %14 = vsyncpa [#allocation3], 0  ;;  %s4817_s0 = inlined_call_operand.vmem [shape: f32[16,64], index: 0, kind: input, shape index: {}]   ;;  %s4818_s1 = inlined_call_operand.hbm [shape: bf16[64,256], index: 1, kind: input, shape index: {}]   ;;  %s4819_s2 = inlined_call_operand.vmem [shape: f32[1,256], index: 2, kind: input, shape index: {}]   ;;  %s4820_s3 = inlined_call_operand.hbm [shape: bf16[256,1024], index: 3, kind: input, shape index: {}]   ;;  %s4821_s4 = inlined_call_operand.vmem [shape: f32[1,1024], index: 4, kind: input, shape index: {}]   ;;  %s4822_s5 = inlined_call_operand.hbm [shape: bf16[1024,512], index: 5, kind: input, shape index: {}]   ;;  %s4823_s6 = inlined_call_operand.vmem [shape: f32[1,512], index: 6, kind: input, shape index: {}]   ;;  %s4824_s7 = inlined_call_operand.hbm [shape: bf16[512,128], index: 7, kind: input, shape index: {}]   ;;  %s4825_s8 = inlined_call_operand.vmem [shape: f32[1,128], index: 8, kind: input, shape index: {}]   ;;  %s4826_s9 = inlined_call_operand.hbm [shape: f32[16,128], index: 9, kind: output, shape index: {}]  }
   0x1   :  { %15 = vsyncpa [#allocation6], 0 }
   0x2   :  { %16 = vsyncpa [#allocation9], 0 }
   0x3   :  { %17 = vsyncpa [#allocation4], 0  ;;  %s4609_s30 = smov [#allocation5]   ;;  %s4491_s13 = scalar_lea.hbm %s4820_s3, 16384 }
   0x4   :  { %s39_s10 = sshll.u32 %s4609_s30, 4  ;;  %p4492_p0 = scmp.ne.s32.totalorder %s4820_s3, %s4491_s13  ;;  %s40_s10 = int_to_ptr.vmem [resolvable:$true] %s39_s10 }
   0x5   :  { %p4495_p1 = scmp.lt.u32.totalorder %s4491_s13, %s4820_s3 }
   0x7   :  { %p4497_p2 = pnand %p4495_p1, %p4492_p0 }
   0x9   :  { %4500 = shalt.err (!%p4497_p2)
}
   0xa   :  { %s4501_s18 = scalar_lea.vmem %s40_s10, 16384  ;;  %p4506_p4 = scmp.lt.s32.totalorder %s40_s10, %s40_s10 }
   0xb   :  { %p4502_p3 = scmp.ne.s32.totalorder %s40_s10, %s4501_s18  ;;  %p4507_p5 = scmp.lt.s32.totalorder %s4501_s18, %s4501_s18 }
   0xd   :  { %p4508_p6 = por %p4507_p5, %p4506_p4 }
   0xf   :  { %p4509_p7 = pnand %p4508_p6, %p4502_p3 }
  0x11   :  { %4512 = shalt.err (!%p4509_p7)
}
  0x12   :  { %s4610_s19 = smov 512   ;;  %s4611_s20 = smov 32  }
  0x13   :  { %45 = dma.hbm_to_vmem [thread:$0]  %s4820_s3, 16384, %s40_s10, [#allocation6], %s4610_s19, %s4610_s19, %s4611_s20  }
  0x14   :  { %s4612_s23 = smov [#allocation2]   ;;  %s4513_s27 = scalar_lea.hbm %s4818_s1, 1024 }
  0x15   :  { %s25_s24 = sshll.u32 %s4612_s23, 4  ;;  %p4514_p8 = scmp.ne.s32.totalorder %s4818_s1, %s4513_s27  ;;  %s26_s24 = int_to_ptr.vmem [resolvable:$true] %s25_s24 }
  0x16   :  { %p4517_p9 = scmp.lt.u32.totalorder %s4513_s27, %s4818_s1 }
  0x18   :  { %p4519_p10 = pnand %p4517_p9, %p4514_p8 }
  0x1a   :  { %4522 = shalt.err (!%p4519_p10)
}
  0x1b   :  { %s4523_s12 = scalar_lea.vmem %s26_s24, 1024  ;;  %p4528_p12 = scmp.lt.s32.totalorder %s26_s24, %s26_s24 }
  0x1c   :  { %p4524_p11 = scmp.ne.s32.totalorder %s26_s24, %s4523_s12  ;;  %p4529_p13 = scmp.lt.s32.totalorder %s4523_s12, %s4523_s12 }
  0x1e   :  { %p4530_p0 = por %p4529_p13, %p4528_p12 }
  0x20   :  { %p4531_p1 = pnand %p4530_p0, %p4524_p11 }
  0x22   :  { %4534 = shalt.err (!%p4531_p1)
}
  0x23   :  { %s4613_s3 = smov 128   ;;  %s4614_s10 = smov 8  }
  0x24   :  { %31 = dma.hbm_to_vmem [thread:$0]  %s4818_s1, 1024, %s26_s24, [#allocation3], %s4613_s3, %s4613_s3, %s4614_s10  }
  0x25   :  { %s4615_s15 = smov [#allocation7]   ;;  %s4535_s19 = scalar_lea.hbm %s4822_s5, 32768 }
  0x26   :  { %s53_s16 = sshll.u32 %s4615_s15, 4  ;;  %p4536_p2 = scmp.ne.s32.totalorder %s4822_s5, %s4535_s19  ;;  %s54_s16 = int_to_ptr.vmem [resolvable:$true] %s53_s16 }
  0x27   :  { %p4539_p3 = scmp.lt.u32.totalorder %s4535_s19, %s4822_s5 }
  0x29   :  { %p4541_p4 = pnand %p4539_p3, %p4536_p2 }
  0x2b   :  { %4544 = shalt.err (!%p4541_p4)
}
  0x2c   :  { %s4545_s25 = scalar_lea.vmem %s54_s16, 32768  ;;  %p4550_p6 = scmp.lt.s32.totalorder %s54_s16, %s54_s16 }
  0x2d   :  { %p4546_p5 = scmp.ne.s32.totalorder %s54_s16, %s4545_s25  ;;  %p4551_p7 = scmp.lt.s32.totalorder %s4545_s25, %s4545_s25 }
  0x2f   :  { %p4552_p8 = por %p4551_p7, %p4550_p6 }
  0x31   :  { %p4553_p9 = pnand %p4552_p8, %p4546_p5 }
  0x33   :  { %4556 = shalt.err (!%p4553_p9)
}
  0x34   :  { %s4616_s1 = smov 256   ;;  %s4617_s24 = smov 16  }
  0x35   :  { %59 = dma.hbm_to_vmem [thread:$0]  %s4822_s5, 32768, %s54_s16, [#allocation6], %s4616_s1, %s4616_s1, %s4617_s24  }
  0x36   :  { %s4618_s28 = smov [#allocation8]   ;;  %s4557_s12 = scalar_lea.hbm %s4824_s7, 4096 }
  0x37   :  { %s67_s29 = sshll.u32 %s4618_s28, 4  ;;  %p4558_p10 = scmp.ne.s32.totalorder %s4824_s7, %s4557_s12  ;;  %s68_s29 = int_to_ptr.vmem [resolvable:$true] %s67_s29 }
  0x38   :  { %p4561_p11 = scmp.lt.u32.totalorder %s4557_s12, %s4824_s7 }
  0x3a   :  { %p4563_p12 = pnand %p4561_p11, %p4558_p10 }
  0x3c   :  { %4566 = shalt.err (!%p4563_p12)
}
  0x3d   :  { %s4567_s18 = scalar_lea.vmem %s68_s29, 4096  ;;  %p4572_p0 = scmp.lt.s32.totalorder %s68_s29, %s68_s29 }
  0x3e   :  { %p4568_p13 = scmp.ne.s32.totalorder %s68_s29, %s4567_s18  ;;  %p4573_p1 = scmp.lt.s32.totalorder %s4567_s18, %s4567_s18 }
  0x40   :  { %p4574_p2 = por %p4573_p1, %p4572_p0 }
  0x42   :  { %p4575_p3 = pnand %p4574_p2, %p4568_p13 }
  0x44   :  { %4578 = shalt.err (!%p4575_p3)
}
  0x45   :  { %s4619_s5 = smov 64   ;;  %s4620_s16 = smov 4  }
  0x46   :  { %73 = dma.hbm_to_vmem [thread:$0]  %s4824_s7, 4096, %s68_s29, [#allocation9], %s4619_s5, %s4619_s5, %s4620_s16  }
  0x47   :  { %4601 = dma.done.wait [#allocation3], 1024  }
  0x48   :  { %4602 = vsyncadd [#allocation3], 4294966272 }
  0x49   :  { %4603 = dma.done.wait [#allocation6], 49152  }
  0x4a   :  { %4604 = vsyncadd [#allocation6], 4294918144 }
  0x4b   :  { %4605 = dma.done.wait [#allocation9], 4096  }
  0x4c   :  { %4606 = vsyncadd [#allocation9], 4294963200  ;;  %v4621_v0 = vmov 0   ;;  %v4007_v1 = vld [vmem:[#allocation2 + $0x4] ss:$8 sps:$4 sm:$0xff]   ;;  %vm152_vm0 = vcmask 523264  }
  0x4d   :  { %188 = vmatprep.mubr.bf16.mxu0 %v4621_v0  ;;  %v4009_v2 = vld [vmem:[#allocation2] ss:$8 sps:$4 sm:$0xff]   ;;  %156 = vmatprep.subr.bf16.mxu0 %v4007_v1  ;;  %v4010_v3 = vld [vmem:[#allocation2 + $0x14] ss:$8 sps:$4 sm:$0xff]   ;;  %v4012_v4 = vld [vmem:[#allocation2 + $0x10] ss:$8 sps:$4 sm:$0xff]  }
  0x4e   :  { %157 = vmatpush1.bf16.msra.mxu0 %v4009_v2  ;;  %v4013_v5 = vld [vmem:[#allocation2 + $0x24] ss:$8 sps:$4 sm:$0xff]   ;;  %v4015_v8 = vld [vmem:[#allocation2 + $0x20] ss:$8 sps:$4 sm:$0xff]   ;;  %v4016_v13 = vld [vmem:[#allocation2 + $0x34] ss:$8 sps:$4 sm:$0xff]  }
  0x4f   :  { %158 = vmatprep.subr.bf16.mxu0 %v4010_v3  ;;  %v205_v6 = vld [vmem:[#allocation5] sm:$0xff]  ;;  %v206_v16 = vld [vmem:[#allocation5 + $0x8] sm:$0xff]  ;;  %v4018_v20 = vld [vmem:[#allocation2 + $0x30] ss:$8 sps:$4 sm:$0xff]   ;;  %s4622_s27 = smov [#allocation10]  }
  0x50   :  { %v209_v7 = vld [vmem:[#allocation5 + $0x20] sm:$0xff]  ;;  %v210_v17 = vld [vmem:[#allocation5 + $0x28] sm:$0xff]  ;;  %s3477_s28 = sshll.u32 %s4622_s27, 4  ;;  %s3478_s28 = int_to_ptr.vmem [resolvable:$true] %s3477_s28 }
  0x51   :  { %v3501_v9 = vcombine.high %v205_v6, %v209_v7  ;;  %v3500_v10 = vcombine.low %v205_v6, %v209_v7  ;;  %v213_v11 = vld [vmem:[#allocation5 + $0x40] sm:$0xff]  ;;  %v90_v22 = vld [vmem:[%s4817_s0 + $0x8] sm:$0xff]  ;;  %v3503_v24 = vcombine.high %v206_v16, %v210_v17  ;;  %v3502_v31 = vcombine.low %v206_v16, %v210_v17  ;;  %p4584_p5 = scmp.lt.s32.totalorder %s3478_s28, %s3478_s28 }
  0x52   :  { %159 = vmatpush1.bf16.msra.mxu0 %v4012_v4  ;;  %v217_v12 = vld [vmem:[#allocation5 + $0x60] sm:$0xff]  ;;  %v214_v27 = vld [vmem:[#allocation5 + $0x48] sm:$0xff] }
  0x53   :  { %160 = vmatprep.subr.bf16.mxu0 %v4013_v5  ;;  %v3509_v14 = vcombine.high %v213_v11, %v217_v12  ;;  %v221_v15 = vld [vmem:[#allocation5 + $0x80] sm:$0xff]  ;;  %1015 = vmatprep.subr.bf16.mxu1 %v3501_v9  ;;  %v3508_v19 = vcombine.low %v213_v11, %v217_v12  ;;  %v218_v28 = vld [vmem:[#allocation5 + $0x68] sm:$0xff] }
  0x54   :  { %v225_v18 = vld [vmem:[#allocation5 + $0xa0] sm:$0xff]  ;;  %1016 = vmatpush1.bf16.msra.mxu1 %v3500_v10  ;;  %v3511_v33 = vcombine.high %v214_v27, %v218_v28  ;;  %v222_v36 = vld [vmem:[#allocation5 + $0x88] sm:$0xff]  ;;  %v3510_v39 = vcombine.low %v214_v27, %v218_v28 }
  0x55   :  { %v89_v21 = vld [vmem:[%s4817_s0] sm:$0xff]  ;;  %1017 = vmatprep.subr.bf16.mxu1 %v3509_v14  ;;  %v3517_v23 = vcombine.high %v221_v15, %v225_v18  ;;  %v3516_v30 = vcombine.low %v221_v15, %v225_v18  ;;  %v226_v37 = vld [vmem:[#allocation5 + $0xa8] sm:$0xff] }
  0x56   :  { %161 = vmatpush1.bf16.msra.mxu0 %v4015_v8  ;;  %v229_v25 = vld [vmem:[#allocation5 + $0xc0] sm:$0xff]  ;;  %v91_v29 = vpack.c.bf16 %v90_v22, %v89_v21  ;;  %v3519_v41 = vcombine.high %v222_v36, %v226_v37  ;;  %v230_v44 = vld [vmem:[#allocation5 + $0xc8] sm:$0xff]  ;;  %v3518_v49 = vcombine.low %v222_v36, %v226_v37 }
  0x57   :  { %162 = vmatprep.subr.bf16.mxu0 %v4016_v13  ;;  %v233_v26 = vld [vmem:[#allocation5 + $0xe0] sm:$0xff]  ;;  %v234_v45 = vld [vmem:[#allocation5 + $0xe8] sm:$0xff] }
  0x58   :  { %1018 = vmatpush1.bf16.msra.mxu1 %v3508_v19  ;;  %v3525_v32 = vcombine.high %v229_v25, %v233_v26  ;;  %v237_v34 = vld [vmem:[#allocation5 + $0x100] sm:$0xff]  ;;  %v3524_v38 = vcombine.low %v229_v25, %v233_v26  ;;  %v238_v50 = vld [vmem:[#allocation5 + $0x108] sm:$0xff]  ;;  %v3527_v53 = vcombine.high %v230_v44, %v234_v45  ;;  %v3526_v57 = vcombine.low %v230_v44, %v234_v45 }
  0x59   :  { %1019 = vmatprep.subr.bf16.mxu1 %v3517_v23  ;;  %v241_v35 = vld [vmem:[#allocation5 + $0x120] sm:$0xff]  ;;  %v242_v51 = vld [vmem:[#allocation5 + $0x128] sm:$0xff] }
  0x5a   :  { %163 = vmatpush1.bf16.msra.mxu0 %v4018_v20  ;;  %v3533_v40 = vcombine.high %v237_v34, %v241_v35  ;;  %v245_v42 = vld [vmem:[#allocation5 + $0x140] sm:$0xff]  ;;  %v3532_v46 = vcombine.low %v237_v34, %v241_v35  ;;  %v246_v58 = vld [vmem:[#allocation5 + $0x148] sm:$0xff]  ;;  %v3535_v61 = vcombine.high %v238_v50, %v242_v51  ;;  %v3534_v1 = vcombine.low %v238_v50, %v242_v51 }
  0x5b   :  { %1058 = vmatprep.subr.bf16.mxu0 %v3503_v24  ;;  %v249_v43 = vld [vmem:[#allocation5 + $0x160] sm:$0xff]  ;;  %v250_v59 = vld [vmem:[#allocation5 + $0x168] sm:$0xff] }
  0x5c   :  { %1020 = vmatpush1.bf16.msra.mxu1 %v3516_v30  ;;  %v253_v47 = vld [vmem:[#allocation5 + $0x180] sm:$0xff]  ;;  %v3541_v52 = vcombine.high %v245_v42, %v249_v43  ;;  %v3540_v54 = vcombine.low %v245_v42, %v249_v43  ;;  %v254_v2 = vld [vmem:[#allocation5 + $0x188] sm:$0xff]  ;;  %v3543_v5 = vcombine.high %v246_v58, %v250_v59  ;;  %v3542_v9 = vcombine.low %v246_v58, %v250_v59 }
  0x5d   :  { %3499 = vmatmul.mubr.msk.bf16.vlgmr.msra.gmra.mrb[0].mxu0 %vm152_vm0, %v91_v29  ;;  %1021 = vmatprep.subr.bf16.mxu1 %v3525_v32  ;;  %v257_v48 = vld [vmem:[#allocation5 + $0x1a0] sm:$0xff]  ;;  %v258_v3 = vld [vmem:[#allocation5 + $0x1a8] sm:$0xff] }
  0x5e   :  { %1059 = vmatpush1.bf16.msra.mxu0 %v3502_v31  ;;  %v261_v55 = vld [vmem:[#allocation5 + $0x1c0] sm:$0xff]  ;;  %v3549_v60 = vcombine.high %v253_v47, %v257_v48  ;;  %v3548_v62 = vcombine.low %v253_v47, %v257_v48  ;;  %v262_v10 = vld [vmem:[#allocation5 + $0x1c8] sm:$0xff]  ;;  %v3551_v13 = vcombine.high %v254_v2, %v258_v3  ;;  %v3550_v17 = vcombine.low %v254_v2, %v258_v3 }
  0x5f   :  { %1060 = vmatprep.subr.bf16.mxu0 %v3511_v33  ;;  %v265_v56 = vld [vmem:[#allocation5 + $0x1e0] sm:$0xff]  ;;  %v266_v11 = vld [vmem:[#allocation5 + $0x1e8] sm:$0xff] }
  0x60   :  { %1022 = vmatpush1.bf16.msra.mxu1 %v3524_v38  ;;  %v269_v63 = vld [vmem:[#allocation5 + $0x200] sm:$0xff]  ;;  %v3557_v4 = vcombine.high %v261_v55, %v265_v56  ;;  %v3556_v6 = vcombine.low %v261_v55, %v265_v56  ;;  %v270_v18 = vld [vmem:[#allocation5 + $0x208] sm:$0xff]  ;;  %v3559_v21 = vcombine.high %v262_v10, %v266_v11  ;;  %v3558_v25 = vcombine.low %v262_v10, %v266_v11 }
  0x61   :  { %1023 = vmatprep.subr.bf16.mxu1 %v3533_v40  ;;  %v273_v0 = vld [vmem:[#allocation5 + $0x220] sm:$0xff]  ;;  %v274_v19 = vld [vmem:[#allocation5 + $0x228] sm:$0xff] }
  0x62   :  { %1061 = vmatpush1.bf16.msra.mxu0 %v3510_v39  ;;  %v277_v7 = vld [vmem:[#allocation5 + $0x240] sm:$0xff]  ;;  %v3565_v12 = vcombine.high %v269_v63, %v273_v0  ;;  %v3564_v14 = vcombine.low %v269_v63, %v273_v0  ;;  %v278_v26 = vld [vmem:[#allocation5 + $0x248] sm:$0xff]  ;;  %v3567_v29 = vcombine.high %v270_v18, %v274_v19  ;;  %v3566_v31 = vcombine.low %v270_v18, %v274_v19 }
  0x63   :  { %1062 = vmatprep.subr.bf16.mxu0 %v3519_v41  ;;  %v281_v8 = vld [vmem:[#allocation5 + $0x260] sm:$0xff]  ;;  %v282_v27 = vld [vmem:[#allocation5 + $0x268] sm:$0xff] }
  0x64   :  { %1024 = vmatpush1.bf16.msra.mxu1 %v3532_v46  ;;  %v285_v15 = vld [vmem:[#allocation5 + $0x280] sm:$0xff]  ;;  %v3573_v20 = vcombine.high %v277_v7, %v281_v8  ;;  %v3572_v22 = vcombine.low %v277_v7, %v281_v8  ;;  %v286_v32 = vld [vmem:[#allocation5 + $0x288] sm:$0xff]  ;;  %v3575_v35 = vcombine.high %v278_v26, %v282_v27  ;;  %v3574_v36 = vcombine.low %v278_v26, %v282_v27 }
  0x65   :  { %1025 = vmatprep.subr.bf16.mxu1 %v3541_v52  ;;  %v289_v16 = vld [vmem:[#allocation5 + $0x2a0] sm:$0xff]  ;;  %v290_v33 = vld [vmem:[#allocation5 + $0x2a8] sm:$0xff] }
  0x66   :  { %1063 = vmatpush1.bf16.msra.mxu0 %v3518_v49  ;;  %v293_v23 = vld [vmem:[#allocation5 + $0x2c0] sm:$0xff]  ;;  %v3581_v28 = vcombine.high %v285_v15, %v289_v16  ;;  %v3580_v30 = vcombine.low %v285_v15, %v289_v16  ;;  %v294_v37 = vld [vmem:[#allocation5 + $0x2c8] sm:$0xff]  ;;  %v3583_v39 = vcombine.high %v286_v32, %v290_v33  ;;  %v3582_v40 = vcombine.low %v286_v32, %v290_v33  ;;  %v212_v16 = vld [vmem:[#allocation5 + $0x38] sm:$0xff] }
  0x67   :  { %1064 = vmatprep.subr.bf16.mxu0 %v3527_v53  ;;  %v297_v24 = vld [vmem:[#allocation5 + $0x2e0] sm:$0xff]  ;;  %v298_v38 = vld [vmem:[#allocation5 + $0x2e8] sm:$0xff] }
  0x68   :  { %1026 = vmatpush1.bf16.msra.mxu1 %v3540_v54  ;;  %v3589_v34 = vcombine.high %v293_v23, %v297_v24  ;;  %v3591_v41 = vcombine.high %v294_v37, %v298_v38  ;;  %v3590_v42 = vcombine.low %v294_v37, %v298_v38  ;;  %v3588_v43 = vcombine.low %v293_v23, %v297_v24  ;;  %v301_v44 = vld [vmem:[#allocation5 + $0x300] sm:$0xff]  ;;  %v302_v46 = vld [vmem:[#allocation5 + $0x308] sm:$0xff]  ;;  %v215_v38 = vld [vmem:[#allocation5 + $0x50] sm:$0xff] }
  0x69   :  { %1027 = vmatprep.subr.bf16.mxu1 %v3549_v60  ;;  %v305_v45 = vld [vmem:[#allocation5 + $0x320] sm:$0xff]  ;;  %v306_v48 = vld [vmem:[#allocation5 + $0x328] sm:$0xff] }
  0x6a   :  { %1065 = vmatpush1.bf16.msra.mxu0 %v3526_v57  ;;  %v3597_v47 = vcombine.high %v301_v44, %v305_v45  ;;  %v3598_v49 = vcombine.low %v302_v46, %v306_v48  ;;  %v3599_v50 = vcombine.high %v302_v46, %v306_v48  ;;  %v3596_v51 = vcombine.low %v301_v44, %v305_v45  ;;  %v309_v52 = vld [vmem:[#allocation5 + $0x340] sm:$0xff]  ;;  %v310_v54 = vld [vmem:[#allocation5 + $0x348] sm:$0xff]  ;;  %v223_v45 = vld [vmem:[#allocation5 + $0x90] sm:$0xff] }
  0x6b   :  { %1066 = vmatprep.subr.bf16.mxu0 %v3535_v61  ;;  %v313_v53 = vld [vmem:[#allocation5 + $0x360] sm:$0xff]  ;;  %v314_v56 = vld [vmem:[#allocation5 + $0x368] sm:$0xff]  ;;  %v227_v48 = vld [vmem:[#allocation5 + $0xb0] sm:$0xff] }
  0x6c   :  { %1028 = vmatpush1.bf16.msra.mxu1 %v3548_v62  ;;  %v3605_v55 = vcombine.high %v309_v52, %v313_v53  ;;  %v3606_v57 = vcombine.low %v310_v54, %v314_v56  ;;  %v3607_v58 = vcombine.high %v310_v54, %v314_v56  ;;  %v3604_v59 = vcombine.low %v309_v52, %v313_v53  ;;  %v317_v60 = vld [vmem:[#allocation5 + $0x380] sm:$0xff]  ;;  %v318_v62 = vld [vmem:[#allocation5 + $0x388] sm:$0xff]  ;;  %v235_v56 = vld [vmem:[#allocation5 + $0xf0] sm:$0xff] }
  0x6d   :  { %1029 = vmatprep.subr.bf16.mxu1 %v3557_v4  ;;  %v321_v61 = vld [vmem:[#allocation5 + $0x3a0] sm:$0xff]  ;;  %v322_v0 = vld [vmem:[#allocation5 + $0x3a8] sm:$0xff]  ;;  %v3521_v53 = vcombine.high %v223_v45, %v227_v48 }
  0x6e   :  { %1067 = vmatpush1.bf16.msra.mxu0 %v3534_v1  ;;  %v3613_v63 = vcombine.high %v317_v60, %v321_v61  ;;  %v325_v1 = vld [vmem:[#allocation5 + $0x3c0] sm:$0xff]  ;;  %v3615_v3 = vcombine.high %v318_v62, %v322_v0  ;;  %v3612_v4 = vcombine.low %v317_v60, %v321_v61  ;;  %v3614_v7 = vcombine.low %v318_v62, %v322_v0  ;;  %v243_v0 = vld [vmem:[#allocation5 + $0x130] sm:$0xff] }
  0x6f   :  { %1068 = vmatprep.subr.bf16.mxu0 %v3543_v5  ;;  %v329_v2 = vld [vmem:[#allocation5 + $0x3e0] sm:$0xff]  ;;  %v326_v5 = vld [vmem:[#allocation5 + $0x3c8] sm:$0xff] }
  0x70   :  { %1030 = vmatpush1.bf16.msra.mxu1 %v3556_v6  ;;  %v330_v6 = vld [vmem:[#allocation5 + $0x3e8] sm:$0xff]  ;;  %v3621_v8 = vcombine.high %v325_v1, %v329_v2  ;;  %v3620_v10 = vcombine.low %v325_v1, %v329_v2  ;;  %v100_v23 = vld [vmem:[%s4819_s2] sm:$0x3]  ;;  %v240_v1 = vld [vmem:[#allocation5 + $0x118] sm:$0xff] }
  0x71   :  { %1031 = vmatprep.subr.bf16.mxu1 %v3565_v12  ;;  %v3622_v11 = vcombine.low %v326_v5, %v330_v6  ;;  %v207_v12 = vld [vmem:[#allocation5 + $0x10] sm:$0xff]  ;;  %v244_v2 = vld [vmem:[#allocation5 + $0x138] sm:$0xff] }
  0x72   :  { %1069 = vmatpush1.bf16.msra.mxu0 %v3542_v9  ;;  %v3623_v9 = vcombine.high %v326_v5, %v330_v6  ;;  %v3539_v6 = vcombine.high %v240_v1, %v244_v2 }
  0x73   :  { %1070 = vmatprep.subr.bf16.mxu0 %v3551_v13  ;;  %v211_v13 = vld [vmem:[#allocation5 + $0x30] sm:$0xff] }
  0x74   :  { %1032 = vmatpush1.bf16.msra.mxu1 %v3564_v14  ;;  %v208_v14 = vld [vmem:[#allocation5 + $0x18] sm:$0xff]  ;;  %v3505_v15 = vcombine.high %v207_v12, %v211_v13 }
  0x75   :  { %1033 = vmatprep.subr.bf16.mxu1 %v3573_v20  ;;  %v3506_v18 = vcombine.low %v208_v14, %v212_v16  ;;  %v3507_v19 = vcombine.high %v208_v14, %v212_v16  ;;  %v102_v20 = vlaneseq  ;;  %v259_v16 = vld [vmem:[#allocation5 + $0x1b0] sm:$0xff] }
  0x76   :  { %1071 = vmatpush1.bf16.msra.mxu0 %v3550_v17  ;;  %v3504_v17 = vcombine.low %v207_v12, %v211_v13  ;;  %v3538_v12 = vcombine.low %v240_v1, %v244_v2 }
  0x77   :  { %1072 = vmatprep.subr.bf16.mxu0 %v3559_v21  ;;  %v4730_v21 = vshrl.u32 %v102_v20, 7 }
  0x78   :  { %1034 = vmatpush1.bf16.msra.mxu1 %v3572_v22 }
  0x79   :  { %1035 = vmatprep.subr.bf16.mxu1 %v3581_v28  ;;  %v4733_v22 = vsub.s32 0, %v4730_v21  ;;  %v4739_v24 = vsub.s32 1, %v4730_v21 }
  0x7a   :  { %1073 = vmatpush1.bf16.msra.mxu0 %v3558_v25 }
  0x7b   :  { %1074 = vmatprep.subr.bf16.mxu0 %v3567_v29  ;;  %v105_v25 = vrot.slane %v100_v23, %v4733_v22  ;;  %v109_v26 = vrot.slane %v100_v23, %v4739_v24 }
  0x7c   :  { %1036 = vmatpush1.bf16.msra.mxu1 %v3580_v30 }
  0x7d   :  { %1037 = vmatprep.subr.bf16.mxu1 %v3589_v34 }
  0x7e   :  { %1075 = vmatpush1.bf16.msra.mxu0 %v3566_v31 }
  0x7f   :  { %1076 = vmatprep.subr.bf16.mxu0 %v3575_v35 }
  0x80   :  { %1038 = vmatpush1.bf16.msra.mxu1 %v3588_v43  ;;  %v220_v43 = vld [vmem:[#allocation5 + $0x78] sm:$0xff] }
  0x81   :  { %1039 = vmatprep.subr.bf16.mxu1 %v3597_v47 }
  0x82   :  { %1077 = vmatpush1.bf16.msra.mxu0 %v3574_v36 }
  0x83   :  { %1078 = vmatprep.subr.bf16.mxu0 %v3583_v39 }
  0x84   :  { %1040 = vmatpush1.bf16.msra.mxu1 %v3596_v51 }
  0x85   :  { %1041 = vmatprep.subr.bf16.mxu1 %v3605_v55  ;;  %v231_v55 = vld [vmem:[#allocation5 + $0xd0] sm:$0xff] }
  0x86   :  { %1079 = vmatpush1.bf16.msra.mxu0 %v3582_v40  ;;  %v3529_v61 = vcombine.high %v231_v55, %v235_v56 }
  0x87   :  { %1080 = vmatprep.subr.bf16.mxu0 %v3591_v41  ;;  %v219_v41 = vld [vmem:[#allocation5 + $0x70] sm:$0xff] }
  0x88   :  { %1042 = vmatpush1.bf16.msra.mxu1 %v3604_v59  ;;  %v3513_v46 = vcombine.high %v215_v38, %v219_v41  ;;  %v3512_v51 = vcombine.low %v215_v38, %v219_v41  ;;  %v3520_v59 = vcombine.low %v223_v45, %v227_v48  ;;  %v280_v45 = vld [vmem:[#allocation5 + $0x258] sm:$0xff] }
  0x89   :  { %1043 = vmatprep.subr.bf16.mxu1 %v3613_v63  ;;  %v239_v63 = vld [vmem:[#allocation5 + $0x110] sm:$0xff] }
  0x8a   :  { %1081 = vmatpush1.bf16.msra.mxu0 %v3590_v42  ;;  %v216_v42 = vld [vmem:[#allocation5 + $0x58] sm:$0xff]  ;;  %v3537_v5 = vcombine.high %v239_v63, %v243_v0 }
  0x8b   :  { %1082 = vmatprep.subr.bf16.mxu0 %v3599_v50  ;;  %v3515_v47 = vcombine.high %v216_v42, %v220_v43  ;;  %v228_v50 = vld [vmem:[#allocation5 + $0xb8] sm:$0xff]  ;;  %v3514_v52 = vcombine.low %v216_v42, %v220_v43  ;;  %v279_v43 = vld [vmem:[#allocation5 + $0x250] sm:$0xff] }
  0x8c   :  { %1044 = vmatpush1.bf16.msra.mxu1 %v3612_v4 }
  0x8d   :  { %1045 = vmatprep.subr.bf16.mxu1 %v3621_v8  ;;  %v251_v8 = vld [vmem:[#allocation5 + $0x170] sm:$0xff] }
  0x8e   :  { %1083 = vmatpush1.bf16.msra.mxu0 %v3598_v49  ;;  %v224_v49 = vld [vmem:[#allocation5 + $0x98] sm:$0xff] }
  0x8f   :  { %1084 = vmatprep.subr.bf16.mxu0 %v3607_v58  ;;  %v3523_v54 = vcombine.high %v224_v49, %v228_v50  ;;  %v236_v58 = vld [vmem:[#allocation5 + $0xf8] sm:$0xff]  ;;  %v3522_v60 = vcombine.low %v224_v49, %v228_v50 }
  0x90   :  { %1046 = vmatpush1.bf16.msra.mxu1 %v3620_v10  ;;  %v252_v10 = vld [vmem:[#allocation5 + $0x178] sm:$0xff] }
  0x91   :  { %1101 = vmatprep.subr.bf16.mxu1 %v3505_v15  ;;  %v255_v15 = vld [vmem:[#allocation5 + $0x190] sm:$0xff] }
  0x92   :  { %1085 = vmatpush1.bf16.msra.mxu0 %v3606_v57  ;;  %v232_v57 = vld [vmem:[#allocation5 + $0xd8] sm:$0xff]  ;;  %v3553_v23 = vcombine.high %v255_v15, %v259_v16 }
  0x93   :  { %1086 = vmatprep.subr.bf16.mxu0 %v3615_v3  ;;  %v3531_v62 = vcombine.high %v232_v57, %v236_v58  ;;  %v3528_v3 = vcombine.low %v231_v55, %v235_v56  ;;  %v3530_v4 = vcombine.low %v232_v57, %v236_v58 }
  0x96   :  { %1087 = vmatpush1.bf16.msra.mxu0 %v3614_v7  ;;  %v247_v7 = vld [vmem:[#allocation5 + $0x150] sm:$0xff] }
  0x97   :  { %1088 = vmatprep.subr.bf16.mxu0 %v3623_v9  ;;  %v248_v9 = vld [vmem:[#allocation5 + $0x158] sm:$0xff]  ;;  %v3545_v13 = vcombine.high %v247_v7, %v251_v8 }
  0x98   :  { %v3547_v14 = vcombine.high %v248_v9, %v252_v10  ;;  %v3546_v20 = vcombine.low %v248_v9, %v252_v10 }
  0x9a   :  { %1089 = vmatpush1.bf16.msra.mxu0 %v3622_v11  ;;  %v3536_v11 = vcombine.low %v239_v63, %v243_v0 }
  0x9b   :  { %1144 = vmatprep.subr.bf16.mxu0 %v3507_v19  ;;  %v3544_v19 = vcombine.low %v247_v7, %v251_v8 }
 0x130   :  { %v190_v27 = vpop.f32.mrb[0].mxu0 }
 0x131   :  { %v191_v28 = vadd.f32 %v190_v27, %v105_v25  ;;  %v192_v29 = vpop.f32.mrb[1].mxu0  ;;  %v267_v27 = vld [vmem:[#allocation5 + $0x1f0] sm:$0xff] }
 0x132   :  { %v193_v30 = vadd.f32 %v192_v29, %v109_v26  ;;  %v194_v31 = vpop.f32.mrb[2].mxu0  ;;  %v268_v29 = vld [vmem:[#allocation5 + $0x1f8] sm:$0xff] }
 0x133   :  { %4435 = vtanh.f32 %v191_v28  ;;  %v195_v32 = vadd.f32 %v194_v31, %v105_v25  ;;  %v196_v33 = vpop.f32.mrb[3].mxu0  ;;  %v264_v28 = vld [vmem:[#allocation5 + $0x1d8] sm:$0xff] }
 0x134   :  { %4437 = vtanh.f32 %v193_v30  ;;  %v197_v34 = vadd.f32 %v196_v33, %v109_v26  ;;  %v263_v26 = vld [vmem:[#allocation5 + $0x1d0] sm:$0xff]  ;;  %v3552_v30 = vcombine.low %v255_v15, %v259_v16  ;;  %v3563_v33 = vcombine.high %v264_v28, %v268_v29 }
 0x135   :  { %4439 = vtanh.f32 %v195_v32  ;;  %v3561_v32 = vcombine.high %v263_v26, %v267_v27  ;;  %v3560_v38 = vcombine.low %v263_v26, %v267_v27 }
 0x136   :  { %4441 = vtanh.f32 %v197_v34  ;;  %v271_v34 = vld [vmem:[#allocation5 + $0x210] sm:$0xff] }
 0x13d   :  { %v4436_v35 = vpop.eup %4435 }
 0x13e   :  { %v4438_v36 = vpop.eup %4437 }
 0x13f   :  { %v4440_v37 = vpop.eup %4439 }
 0x140   :  { %v4442_v39 = vpop.eup %4441  ;;  %v4743_v40 = vpack.c.bf16 %v4440_v37, %v4436_v35  ;;  %v275_v35 = vld [vmem:[#allocation5 + $0x230] sm:$0xff]  ;;  %v276_v37 = vld [vmem:[#allocation5 + $0x238] sm:$0xff] }
 0x141   :  { %v204_v44 = vpack.c.bf16 %v4442_v39, %v4438_v36  ;;  %v272_v36 = vld [vmem:[#allocation5 + $0x218] sm:$0xff]  ;;  %v3562_v39 = vcombine.low %v264_v28, %v268_v29  ;;  %v3569_v41 = vcombine.high %v271_v34, %v275_v35 }
 0x142   :  { %v3571_v42 = vcombine.high %v272_v36, %v276_v37  ;;  %v3570_v48 = vcombine.low %v272_v36, %v276_v37 }
 0x143   :  { %1047 = vmatprep.mubr.bf16.mxu1 %v204_v44  ;;  %1090 = vmatprep.mubr.bf16.mxu0 %v204_v44 }
 0x144   :  { %1048 = vmatmul.mubr.bf16.vlgmr.msra.gmra.mrb[0].mxu1 %v4743_v40  ;;  %1091 = vmatmul.mubr.bf16.vlgmr.msra.gmra.mrb[4].mxu0 %v4743_v40 }
 0x145   :  { %1102 = vmatpush1.bf16.msra.mxu1 %v3504_v17  ;;  %1145 = vmatpush1.bf16.msra.mxu0 %v3506_v18  ;;  %v256_v17 = vld [vmem:[#allocation5 + $0x198] sm:$0xff] }
 0x146   :  { %1133 = vmatprep.mubr.bf16.mxu1 %v204_v44  ;;  %1176 = vmatprep.mubr.bf16.mxu0 %v204_v44  ;;  %v260_v18 = vld [vmem:[#allocation5 + $0x1b8] sm:$0xff]  ;;  %v283_v44 = vld [vmem:[#allocation5 + $0x270] sm:$0xff] }
 0x147   :  { %1103 = vmatprep.subr.bf16.mxu1 %v3513_v46  ;;  %1146 = vmatprep.subr.bf16.mxu0 %v3515_v47  ;;  %v3555_v25 = vcombine.high %v256_v17, %v260_v18  ;;  %v3554_v31 = vcombine.low %v256_v17, %v260_v18  ;;  %v284_v46 = vld [vmem:[#allocation5 + $0x278] sm:$0xff]  ;;  %v3568_v47 = vcombine.low %v271_v34, %v275_v35 }
 0x148   :  { %v3577_v49 = vcombine.high %v279_v43, %v283_v44  ;;  %v3579_v50 = vcombine.high %v280_v45, %v284_v46  ;;  %v3576_v55 = vcombine.low %v279_v43, %v283_v44  ;;  %v3578_v56 = vcombine.low %v280_v45, %v284_v46  ;;  %v4019_v43 = vld [vmem:[#allocation7] ss:$16 sps:$4 sm:$0xff]   ;;  %v4022_v44 = vld [vmem:[#allocation7 + $0x8] ss:$16 sps:$4 sm:$0xff]   ;;  %v4027_v45 = vld [vmem:[#allocation7 + $0x24] ss:$16 sps:$4 sm:$0xff]  }
 0x149   :  { %1104 = vmatpush1.bf16.msra.mxu1 %v3512_v51  ;;  %1147 = vmatpush1.bf16.msra.mxu0 %v3514_v52  ;;  %v287_v51 = vld [vmem:[#allocation5 + $0x290] sm:$0xff]  ;;  %v4030_v46 = vld [vmem:[#allocation7 + $0x2c] ss:$16 sps:$4 sm:$0xff]  }
 0x14a   :  { %1105 = vmatprep.subr.bf16.mxu1 %v3521_v53  ;;  %1148 = vmatprep.subr.bf16.mxu0 %v3523_v54  ;;  %v291_v52 = vld [vmem:[#allocation5 + $0x2b0] sm:$0xff]  ;;  %v288_v53 = vld [vmem:[#allocation5 + $0x298] sm:$0xff] }
 0x14b   :  { %v292_v54 = vld [vmem:[#allocation5 + $0x2b8] sm:$0xff]  ;;  %v3585_v57 = vcombine.high %v287_v51, %v291_v52  ;;  %v3584_v63 = vcombine.low %v287_v51, %v291_v52  ;;  %v4031_v51 = vld [vmem:[#allocation7 + $0x40] ss:$16 sps:$4 sm:$0xff]  }
 0x14c   :  { %v3587_v58 = vcombine.high %v288_v53, %v292_v54  ;;  %v3586_v0 = vcombine.low %v288_v53, %v292_v54  ;;  %v4034_v52 = vld [vmem:[#allocation7 + $0x48] ss:$16 sps:$4 sm:$0xff]   ;;  %v4039_v53 = vld [vmem:[#allocation7 + $0x64] ss:$16 sps:$4 sm:$0xff]   ;;  %v4042_v54 = vld [vmem:[#allocation7 + $0x6c] ss:$16 sps:$4 sm:$0xff]  }
 0x14d   :  { %1106 = vmatpush1.bf16.msra.mxu1 %v3520_v59  ;;  %1149 = vmatpush1.bf16.msra.mxu0 %v3522_v60  ;;  %v295_v59 = vld [vmem:[#allocation5 + $0x2d0] sm:$0xff] }
 0x14e   :  { %1107 = vmatprep.subr.bf16.mxu1 %v3529_v61  ;;  %1150 = vmatprep.subr.bf16.mxu0 %v3531_v62  ;;  %v299_v60 = vld [vmem:[#allocation5 + $0x2f0] sm:$0xff]  ;;  %v296_v61 = vld [vmem:[#allocation5 + $0x2d8] sm:$0xff] }
 0x14f   :  { %v300_v62 = vld [vmem:[#allocation5 + $0x2f8] sm:$0xff]  ;;  %v3593_v1 = vcombine.high %v295_v59, %v299_v60  ;;  %v3592_v7 = vcombine.low %v295_v59, %v299_v60  ;;  %v4051_v60 = vld [vmem:[#allocation7 + $0xa4] ss:$16 sps:$4 sm:$0xff]  }
 0x150   :  { %v3595_v2 = vcombine.high %v296_v61, %v300_v62  ;;  %v3594_v8 = vcombine.low %v296_v61, %v300_v62  ;;  %v4046_v59 = vld [vmem:[#allocation7 + $0x88] ss:$16 sps:$4 sm:$0xff]   ;;  %v4054_v61 = vld [vmem:[#allocation7 + $0xac] ss:$16 sps:$4 sm:$0xff]   ;;  %v4049_v62 = vld [vmem:[#allocation7 + $0xa0] ss:$16 sps:$4 sm:$0xff]  }
 0x151   :  { %1108 = vmatpush1.bf16.msra.mxu1 %v3528_v3  ;;  %1151 = vmatpush1.bf16.msra.mxu0 %v3530_v4  ;;  %v303_v3 = vld [vmem:[#allocation5 + $0x310] sm:$0xff] }
 0x152   :  { %1109 = vmatprep.subr.bf16.mxu1 %v3537_v5  ;;  %1152 = vmatprep.subr.bf16.mxu0 %v3539_v6  ;;  %v307_v4 = vld [vmem:[#allocation5 + $0x330] sm:$0xff]  ;;  %v304_v5 = vld [vmem:[#allocation5 + $0x318] sm:$0xff] }
 0x153   :  { %v308_v6 = vld [vmem:[#allocation5 + $0x338] sm:$0xff]  ;;  %v3601_v9 = vcombine.high %v303_v3, %v307_v4  ;;  %v3600_v15 = vcombine.low %v303_v3, %v307_v4  ;;  %v4063_v4 = vld [vmem:[#allocation7 + $0xe4] ss:$16 sps:$4 sm:$0xff]  }
 0x154   :  { %v3603_v10 = vcombine.high %v304_v5, %v308_v6  ;;  %v3602_v16 = vcombine.low %v304_v5, %v308_v6  ;;  %v4058_v3 = vld [vmem:[#allocation7 + $0xc8] ss:$16 sps:$4 sm:$0xff]   ;;  %v4066_v5 = vld [vmem:[#allocation7 + $0xec] ss:$16 sps:$4 sm:$0xff]   ;;  %v4061_v6 = vld [vmem:[#allocation7 + $0xe0] ss:$16 sps:$4 sm:$0xff]  }
 0x155   :  { %1110 = vmatpush1.bf16.msra.mxu1 %v3536_v11  ;;  %1153 = vmatpush1.bf16.msra.mxu0 %v3538_v12  ;;  %v311_v11 = vld [vmem:[#allocation5 + $0x350] sm:$0xff] }
 0x156   :  { %1111 = vmatprep.subr.bf16.mxu1 %v3545_v13  ;;  %1154 = vmatprep.subr.bf16.mxu0 %v3547_v14  ;;  %v315_v12 = vld [vmem:[#allocation5 + $0x370] sm:$0xff]  ;;  %v312_v13 = vld [vmem:[#allocation5 + $0x358] sm:$0xff] }
 0x157   :  { %v316_v14 = vld [vmem:[#allocation5 + $0x378] sm:$0xff]  ;;  %v3609_v17 = vcombine.high %v311_v11, %v315_v12  ;;  %v3608_v26 = vcombine.low %v311_v11, %v315_v12  ;;  %v4075_v12 = vld [vmem:[#allocation7 + $0x124] ss:$16 sps:$4 sm:$0xff]  }
 0x158   :  { %v3611_v18 = vcombine.high %v312_v13, %v316_v14  ;;  %v3610_v27 = vcombine.low %v312_v13, %v316_v14  ;;  %v4070_v11 = vld [vmem:[#allocation7 + $0x108] ss:$16 sps:$4 sm:$0xff]   ;;  %v4078_v13 = vld [vmem:[#allocation7 + $0x12c] ss:$16 sps:$4 sm:$0xff]   ;;  %v4073_v14 = vld [vmem:[#allocation7 + $0x120] ss:$16 sps:$4 sm:$0xff]  }
 0x159   :  { %1112 = vmatpush1.bf16.msra.mxu1 %v3544_v19  ;;  %1155 = vmatpush1.bf16.msra.mxu0 %v3546_v20  ;;  %v319_v19 = vld [vmem:[#allocation5 + $0x390] sm:$0xff] }
 0x15a   :  { %1113 = vmatprep.subr.bf16.mxu1 %v3553_v23  ;;  %1156 = vmatprep.subr.bf16.mxu0 %v3555_v25  ;;  %v323_v20 = vld [vmem:[#allocation5 + $0x3b0] sm:$0xff]  ;;  %v320_v23 = vld [vmem:[#allocation5 + $0x398] sm:$0xff] }
 0x15b   :  { %v324_v25 = vld [vmem:[#allocation5 + $0x3b8] sm:$0xff]  ;;  %v3617_v28 = vcombine.high %v319_v19, %v323_v20  ;;  %v3616_v34 = vcombine.low %v319_v19, %v323_v20  ;;  %v4087_v20 = vld [vmem:[#allocation7 + $0x164] ss:$16 sps:$4 sm:$0xff]  }
 0x15c   :  { %v3619_v29 = vcombine.high %v320_v23, %v324_v25  ;;  %v3618_v35 = vcombine.low %v320_v23, %v324_v25  ;;  %v4082_v19 = vld [vmem:[#allocation7 + $0x148] ss:$16 sps:$4 sm:$0xff]   ;;  %v4090_v23 = vld [vmem:[#allocation7 + $0x16c] ss:$16 sps:$4 sm:$0xff]   ;;  %v4085_v25 = vld [vmem:[#allocation7 + $0x160] ss:$16 sps:$4 sm:$0xff]  }
 0x15d   :  { %1114 = vmatpush1.bf16.msra.mxu1 %v3552_v30  ;;  %1157 = vmatpush1.bf16.msra.mxu0 %v3554_v31  ;;  %v327_v30 = vld [vmem:[#allocation5 + $0x3d0] sm:$0xff] }
 0x15e   :  { %1115 = vmatprep.subr.bf16.mxu1 %v3561_v32  ;;  %1158 = vmatprep.subr.bf16.mxu0 %v3563_v33  ;;  %v331_v31 = vld [vmem:[#allocation5 + $0x3f0] sm:$0xff]  ;;  %v328_v32 = vld [vmem:[#allocation5 + $0x3d8] sm:$0xff] }
 0x15f   :  { %v332_v33 = vld [vmem:[#allocation5 + $0x3f8] sm:$0xff]  ;;  %v3625_v36 = vcombine.high %v327_v30, %v331_v31 }
 0x160   :  { %v3627_v37 = vcombine.high %v328_v32, %v332_v33 }
 0x161   :  { %1116 = vmatpush1.bf16.msra.mxu1 %v3560_v38  ;;  %1159 = vmatpush1.bf16.msra.mxu0 %v3562_v39  ;;  %v3624_v38 = vcombine.low %v327_v30, %v331_v31  ;;  %v3626_v39 = vcombine.low %v328_v32, %v332_v33  ;;  %v4094_v30 = vld [vmem:[#allocation7 + $0x188] ss:$16 sps:$4 sm:$0xff]   ;;  %v4099_v31 = vld [vmem:[#allocation7 + $0x1a4] ss:$16 sps:$4 sm:$0xff]   ;;  %v4102_v32 = vld [vmem:[#allocation7 + $0x1ac] ss:$16 sps:$4 sm:$0xff]  }
 0x162   :  { %1117 = vmatprep.subr.bf16.mxu1 %v3569_v41  ;;  %1160 = vmatprep.subr.bf16.mxu0 %v3571_v42  ;;  %v4021_v41 = vld [vmem:[#allocation7 + $0x4] ss:$16 sps:$4 sm:$0xff]   ;;  %v4024_v42 = vld [vmem:[#allocation7 + $0xc] ss:$16 sps:$4 sm:$0xff]   ;;  %v4097_v33 = vld [vmem:[#allocation7 + $0x1a0] ss:$16 sps:$4 sm:$0xff]  }
 0x165   :  { %1118 = vmatpush1.bf16.msra.mxu1 %v3568_v47  ;;  %1161 = vmatpush1.bf16.msra.mxu0 %v3570_v48  ;;  %v4025_v47 = vld [vmem:[#allocation7 + $0x20] ss:$16 sps:$4 sm:$0xff]   ;;  %v4028_v48 = vld [vmem:[#allocation7 + $0x28] ss:$16 sps:$4 sm:$0xff]  }
 0x166   :  { %1119 = vmatprep.subr.bf16.mxu1 %v3577_v49  ;;  %1162 = vmatprep.subr.bf16.mxu0 %v3579_v50  ;;  %v4033_v49 = vld [vmem:[#allocation7 + $0x44] ss:$16 sps:$4 sm:$0xff]   ;;  %v4036_v50 = vld [vmem:[#allocation7 + $0x4c] ss:$16 sps:$4 sm:$0xff]  }
 0x169   :  { %1120 = vmatpush1.bf16.msra.mxu1 %v3576_v55  ;;  %1163 = vmatpush1.bf16.msra.mxu0 %v3578_v56  ;;  %v4037_v55 = vld [vmem:[#allocation7 + $0x60] ss:$16 sps:$4 sm:$0xff]   ;;  %v4045_v56 = vld [vmem:[#allocation7 + $0x84] ss:$16 sps:$4 sm:$0xff]  }
 0x16a   :  { %1121 = vmatprep.subr.bf16.mxu1 %v3585_v57  ;;  %1164 = vmatprep.subr.bf16.mxu0 %v3587_v58  ;;  %v4048_v57 = vld [vmem:[#allocation7 + $0x8c] ss:$16 sps:$4 sm:$0xff]   ;;  %v4043_v58 = vld [vmem:[#allocation7 + $0x80] ss:$16 sps:$4 sm:$0xff]  }
 0x16d   :  { %1122 = vmatpush1.bf16.msra.mxu1 %v3584_v63  ;;  %1165 = vmatpush1.bf16.msra.mxu0 %v3586_v0  ;;  %v4052_v63 = vld [vmem:[#allocation7 + $0xa8] ss:$16 sps:$4 sm:$0xff]   ;;  %v4057_v0 = vld [vmem:[#allocation7 + $0xc4] ss:$16 sps:$4 sm:$0xff]  }
 0x16e   :  { %1123 = vmatprep.subr.bf16.mxu1 %v3593_v1  ;;  %1166 = vmatprep.subr.bf16.mxu0 %v3595_v2  ;;  %v4060_v1 = vld [vmem:[#allocation7 + $0xcc] ss:$16 sps:$4 sm:$0xff]   ;;  %v4055_v2 = vld [vmem:[#allocation7 + $0xc0] ss:$16 sps:$4 sm:$0xff]  }
 0x171   :  { %1124 = vmatpush1.bf16.msra.mxu1 %v3592_v7  ;;  %1167 = vmatpush1.bf16.msra.mxu0 %v3594_v8  ;;  %v4064_v7 = vld [vmem:[#allocation7 + $0xe8] ss:$16 sps:$4 sm:$0xff]   ;;  %v4069_v8 = vld [vmem:[#allocation7 + $0x104] ss:$16 sps:$4 sm:$0xff]  }
 0x172   :  { %1125 = vmatprep.subr.bf16.mxu1 %v3601_v9  ;;  %1168 = vmatprep.subr.bf16.mxu0 %v3603_v10  ;;  %v4072_v9 = vld [vmem:[#allocation7 + $0x10c] ss:$16 sps:$4 sm:$0xff]   ;;  %v4067_v10 = vld [vmem:[#allocation7 + $0x100] ss:$16 sps:$4 sm:$0xff]  }
 0x175   :  { %1126 = vmatpush1.bf16.msra.mxu1 %v3600_v15  ;;  %1169 = vmatpush1.bf16.msra.mxu0 %v3602_v16  ;;  %v4076_v15 = vld [vmem:[#allocation7 + $0x128] ss:$16 sps:$4 sm:$0xff]   ;;  %v4081_v16 = vld [vmem:[#allocation7 + $0x144] ss:$16 sps:$4 sm:$0xff]  }
 0x176   :  { %1127 = vmatprep.subr.bf16.mxu1 %v3609_v17  ;;  %1170 = vmatprep.subr.bf16.mxu0 %v3611_v18  ;;  %v4084_v17 = vld [vmem:[#allocation7 + $0x14c] ss:$16 sps:$4 sm:$0xff]   ;;  %v4079_v18 = vld [vmem:[#allocation7 + $0x140] ss:$16 sps:$4 sm:$0xff]  }
 0x179   :  { %1128 = vmatpush1.bf16.msra.mxu1 %v3608_v26  ;;  %1171 = vmatpush1.bf16.msra.mxu0 %v3610_v27  ;;  %v4088_v26 = vld [vmem:[#allocation7 + $0x168] ss:$16 sps:$4 sm:$0xff]   ;;  %v4093_v27 = vld [vmem:[#allocation7 + $0x184] ss:$16 sps:$4 sm:$0xff]  }
 0x17a   :  { %1129 = vmatprep.subr.bf16.mxu1 %v3617_v28  ;;  %1172 = vmatprep.subr.bf16.mxu0 %v3619_v29  ;;  %v4096_v28 = vld [vmem:[#allocation7 + $0x18c] ss:$16 sps:$4 sm:$0xff]   ;;  %v4091_v29 = vld [vmem:[#allocation7 + $0x180] ss:$16 sps:$4 sm:$0xff]  }
 0x17d   :  { %1130 = vmatpush1.bf16.msra.mxu1 %v3616_v34  ;;  %1173 = vmatpush1.bf16.msra.mxu0 %v3618_v35  ;;  %v4100_v34 = vld [vmem:[#allocation7 + $0x1a8] ss:$16 sps:$4 sm:$0xff]   ;;  %v4105_v35 = vld [vmem:[#allocation7 + $0x1c4] ss:$16 sps:$4 sm:$0xff]  }
 0x17e   :  { %1131 = vmatprep.subr.bf16.mxu1 %v3625_v36  ;;  %1174 = vmatprep.subr.bf16.mxu0 %v3627_v37  ;;  %v4108_v36 = vld [vmem:[#allocation7 + $0x1cc] ss:$16 sps:$4 sm:$0xff]   ;;  %v4103_v37 = vld [vmem:[#allocation7 + $0x1c0] ss:$16 sps:$4 sm:$0xff]  }
 0x181   :  { %1132 = vmatpush1.bf16.msra.mxu1 %v3624_v38  ;;  %1175 = vmatpush1.bf16.msra.mxu0 %v3626_v39  ;;  %v4106_v38 = vld [vmem:[#allocation7 + $0x1c8] ss:$16 sps:$4 sm:$0xff]   ;;  %v4111_v39 = vld [vmem:[#allocation7 + $0x1e4] ss:$16 sps:$4 sm:$0xff]  }
 0x182   :  { %2769 = vmatprep.subr.bf16.mxu1 %v4021_v41  ;;  %2941 = vmatprep.subr.bf16.mxu0 %v4024_v42  ;;  %v4114_v41 = vld [vmem:[#allocation7 + $0x1ec] ss:$16 sps:$4 sm:$0xff]   ;;  %v4109_v42 = vld [vmem:[#allocation7 + $0x1e0] ss:$16 sps:$4 sm:$0xff]  }
 0x184   :  { %1134 = vmatmul.mubr.bf16.vlgmr.msra.gmra.mrb[4].mxu1 %v4743_v40  ;;  %1177 = vmatmul.mubr.bf16.vlgmr.msra.gmra.mrb[8].mxu0 %v4743_v40  ;;  %v4040_v40 = vld [vmem:[#allocation7 + $0x68] ss:$16 sps:$4 sm:$0xff]  }
 0x185   :  { %2770 = vmatpush1.bf16.msra.mxu1 %v4019_v43  ;;  %2942 = vmatpush1.bf16.msra.mxu0 %v4022_v44  ;;  %v4112_v43 = vld [vmem:[#allocation7 + $0x1e8] ss:$16 sps:$4 sm:$0xff]   ;;  %v4117_v44 = vld [vmem:[#allocation7 + $0x204] ss:$16 sps:$4 sm:$0xff]  }
 0x186   :  { %2771 = vmatprep.subr.bf16.mxu1 %v4027_v45  ;;  %2943 = vmatprep.subr.bf16.mxu0 %v4030_v46  ;;  %v4120_v45 = vld [vmem:[#allocation7 + $0x20c] ss:$16 sps:$4 sm:$0xff]   ;;  %v345_v46 = vsub.s32 2, %v4730_v21 }
 0x189   :  { %2772 = vmatpush1.bf16.msra.mxu1 %v4025_v47  ;;  %2944 = vmatpush1.bf16.msra.mxu0 %v4028_v48  ;;  %v4753_v47 = vld [vmem:[%s4821_s4] sm:$0xff]  ;;  %v349_v48 = vsub.s32 3, %v4730_v21 }
 0x18a   :  { %2773 = vmatprep.subr.bf16.mxu1 %v4033_v49  ;;  %2945 = vmatprep.subr.bf16.mxu0 %v4036_v50  ;;  %v338_v49 = vrot.slane %v4753_v47, %v4733_v22  ;;  %v346_v50 = vrot.slane %v4753_v47, %v345_v46 }
 0x18d   :  { %2774 = vmatpush1.bf16.msra.mxu1 %v4031_v51  ;;  %2946 = vmatpush1.bf16.msra.mxu0 %v4034_v52  ;;  %v342_v51 = vrot.slane %v4753_v47, %v4739_v24  ;;  %v350_v52 = vrot.slane %v4753_v47, %v349_v48 }
 0x18e   :  { %2775 = vmatprep.subr.bf16.mxu1 %v4039_v53  ;;  %2947 = vmatprep.subr.bf16.mxu0 %v4042_v54 }
 0x191   :  { %2776 = vmatpush1.bf16.msra.mxu1 %v4037_v55  ;;  %2948 = vmatpush1.bf16.msra.mxu0 %v4040_v40 }
 0x192   :  { %2777 = vmatprep.subr.bf16.mxu1 %v4045_v56  ;;  %2949 = vmatprep.subr.bf16.mxu0 %v4048_v57 }
 0x195   :  { %2778 = vmatpush1.bf16.msra.mxu1 %v4043_v58  ;;  %2950 = vmatpush1.bf16.msra.mxu0 %v4046_v59 }
 0x196   :  { %2779 = vmatprep.subr.bf16.mxu1 %v4051_v60  ;;  %2951 = vmatprep.subr.bf16.mxu0 %v4054_v61 }
 0x199   :  { %2780 = vmatpush1.bf16.msra.mxu1 %v4049_v62  ;;  %2952 = vmatpush1.bf16.msra.mxu0 %v4052_v63 }
 0x19a   :  { %2781 = vmatprep.subr.bf16.mxu1 %v4057_v0  ;;  %2953 = vmatprep.subr.bf16.mxu0 %v4060_v1 }
 0x19d   :  { %2782 = vmatpush1.bf16.msra.mxu1 %v4055_v2  ;;  %2954 = vmatpush1.bf16.msra.mxu0 %v4058_v3 }
 0x19e   :  { %2783 = vmatprep.subr.bf16.mxu1 %v4063_v4  ;;  %2955 = vmatprep.subr.bf16.mxu0 %v4066_v5 }
 0x1a1   :  { %2784 = vmatpush1.bf16.msra.mxu1 %v4061_v6  ;;  %2956 = vmatpush1.bf16.msra.mxu0 %v4064_v7 }
 0x1a2   :  { %2785 = vmatprep.subr.bf16.mxu1 %v4069_v8  ;;  %2957 = vmatprep.subr.bf16.mxu0 %v4072_v9 }
 0x1a5   :  { %2786 = vmatpush1.bf16.msra.mxu1 %v4067_v10  ;;  %2958 = vmatpush1.bf16.msra.mxu0 %v4070_v11 }
 0x1a6   :  { %2787 = vmatprep.subr.bf16.mxu1 %v4075_v12  ;;  %2959 = vmatprep.subr.bf16.mxu0 %v4078_v13 }
 0x1a9   :  { %2788 = vmatpush1.bf16.msra.mxu1 %v4073_v14  ;;  %2960 = vmatpush1.bf16.msra.mxu0 %v4076_v15  ;;  %v4115_v15 = vld [vmem:[#allocation7 + $0x200] ss:$16 sps:$4 sm:$0xff]  }
 0x1aa   :  { %2789 = vmatprep.subr.bf16.mxu1 %v4081_v16  ;;  %2961 = vmatprep.subr.bf16.mxu0 %v4084_v17  ;;  %v4118_v16 = vld [vmem:[#allocation7 + $0x208] ss:$16 sps:$4 sm:$0xff]  }
 0x1ad   :  { %2790 = vmatpush1.bf16.msra.mxu1 %v4079_v18  ;;  %2962 = vmatpush1.bf16.msra.mxu0 %v4082_v19  ;;  %v4123_v18 = vld [vmem:[#allocation7 + $0x224] ss:$16 sps:$4 sm:$0xff]   ;;  %v4126_v19 = vld [vmem:[#allocation7 + $0x22c] ss:$16 sps:$4 sm:$0xff]  }
 0x1ae   :  { %2791 = vmatprep.subr.bf16.mxu1 %v4087_v20  ;;  %2963 = vmatprep.subr.bf16.mxu0 %v4090_v23  ;;  %v4121_v20 = vld [vmem:[#allocation7 + $0x220] ss:$16 sps:$4 sm:$0xff]   ;;  %v4124_v23 = vld [vmem:[#allocation7 + $0x228] ss:$16 sps:$4 sm:$0xff]  }
 0x1b1   :  { %2792 = vmatpush1.bf16.msra.mxu1 %v4085_v25  ;;  %2964 = vmatpush1.bf16.msra.mxu0 %v4088_v26  ;;  %v4129_v25 = vld [vmem:[#allocation7 + $0x244] ss:$16 sps:$4 sm:$0xff]   ;;  %v4132_v26 = vld [vmem:[#allocation7 + $0x24c] ss:$16 sps:$4 sm:$0xff]  }
 0x1b2   :  { %2793 = vmatprep.subr.bf16.mxu1 %v4093_v27  ;;  %2965 = vmatprep.subr.bf16.mxu0 %v4096_v28  ;;  %v4127_v27 = vld [vmem:[#allocation7 + $0x240] ss:$16 sps:$4 sm:$0xff]   ;;  %v4130_v28 = vld [vmem:[#allocation7 + $0x248] ss:$16 sps:$4 sm:$0xff]  }
 0x1b5   :  { %2794 = vmatpush1.bf16.msra.mxu1 %v4091_v29  ;;  %2966 = vmatpush1.bf16.msra.mxu0 %v4094_v30  ;;  %v4135_v29 = vld [vmem:[#allocation7 + $0x264] ss:$16 sps:$4 sm:$0xff]   ;;  %v4138_v30 = vld [vmem:[#allocation7 + $0x26c] ss:$16 sps:$4 sm:$0xff]  }
 0x1b6   :  { %2795 = vmatprep.subr.bf16.mxu1 %v4099_v31  ;;  %2967 = vmatprep.subr.bf16.mxu0 %v4102_v32  ;;  %v4133_v31 = vld [vmem:[#allocation7 + $0x260] ss:$16 sps:$4 sm:$0xff]   ;;  %v4136_v32 = vld [vmem:[#allocation7 + $0x268] ss:$16 sps:$4 sm:$0xff]  }
 0x1b9   :  { %2796 = vmatpush1.bf16.msra.mxu1 %v4097_v33  ;;  %2968 = vmatpush1.bf16.msra.mxu0 %v4100_v34  ;;  %v4141_v33 = vld [vmem:[#allocation7 + $0x284] ss:$16 sps:$4 sm:$0xff]   ;;  %v4144_v34 = vld [vmem:[#allocation7 + $0x28c] ss:$16 sps:$4 sm:$0xff]  }
 0x1ba   :  { %2797 = vmatprep.subr.bf16.mxu1 %v4105_v35  ;;  %2969 = vmatprep.subr.bf16.mxu0 %v4108_v36  ;;  %v4139_v35 = vld [vmem:[#allocation7 + $0x280] ss:$16 sps:$4 sm:$0xff]   ;;  %v4142_v36 = vld [vmem:[#allocation7 + $0x288] ss:$16 sps:$4 sm:$0xff]  }
 0x1bd   :  { %2798 = vmatpush1.bf16.msra.mxu1 %v4103_v37  ;;  %2970 = vmatpush1.bf16.msra.mxu0 %v4106_v38  ;;  %v4147_v37 = vld [vmem:[#allocation7 + $0x2a4] ss:$16 sps:$4 sm:$0xff]   ;;  %v4150_v38 = vld [vmem:[#allocation7 + $0x2ac] ss:$16 sps:$4 sm:$0xff]  }
 0x1be   :  { %2799 = vmatprep.subr.bf16.mxu1 %v4111_v39  ;;  %2971 = vmatprep.subr.bf16.mxu0 %v4114_v41  ;;  %v4145_v39 = vld [vmem:[#allocation7 + $0x2a0] ss:$16 sps:$4 sm:$0xff]   ;;  %v4148_v41 = vld [vmem:[#allocation7 + $0x2a8] ss:$16 sps:$4 sm:$0xff]  }
 0x1c1   :  { %2800 = vmatpush1.bf16.msra.mxu1 %v4109_v42  ;;  %2972 = vmatpush1.bf16.msra.mxu0 %v4112_v43  ;;  %v4153_v42 = vld [vmem:[#allocation7 + $0x2c4] ss:$16 sps:$4 sm:$0xff]   ;;  %v4156_v43 = vld [vmem:[#allocation7 + $0x2cc] ss:$16 sps:$4 sm:$0xff]  }
 0x1c2   :  { %2812 = vmatprep.subr.bf16.mxu1 %v4117_v44  ;;  %2984 = vmatprep.subr.bf16.mxu0 %v4120_v45  ;;  %v4151_v44 = vld [vmem:[#allocation7 + $0x2c0] ss:$16 sps:$4 sm:$0xff]   ;;  %v4154_v45 = vld [vmem:[#allocation7 + $0x2c8] ss:$16 sps:$4 sm:$0xff]  }
 0x217   :  { %v1049_v53 = vpop.f32.mrb[0].mxu1  ;;  %v1092_v54 = vpop.f32.mrb[4].mxu0 }
 0x218   :  { %v1050_v55 = vadd.f32 %v1049_v53, %v338_v49  ;;  %v1093_v40 = vadd.f32 %v1092_v54, %v346_v50  ;;  %v1051_v56 = vpop.f32.mrb[1].mxu1  ;;  %v1094_v57 = vpop.f32.mrb[5].mxu0  ;;  %v4165_v53 = vld [vmem:[#allocation7 + $0x304] ss:$16 sps:$4 sm:$0xff]   ;;  %v4168_v54 = vld [vmem:[#allocation7 + $0x30c] ss:$16 sps:$4 sm:$0xff]  }
 0x219   :  { %v1052_v58 = vadd.f32 %v1051_v56, %v342_v51  ;;  %v1095_v59 = vadd.f32 %v1094_v57, %v350_v52  ;;  %v1053_v60 = vpop.f32.mrb[2].mxu1  ;;  %v1096_v61 = vpop.f32.mrb[6].mxu0  ;;  %v4171_v56 = vld [vmem:[#allocation7 + $0x324] ss:$16 sps:$4 sm:$0xff]   ;;  %v4174_v57 = vld [vmem:[#allocation7 + $0x32c] ss:$16 sps:$4 sm:$0xff]  }
 0x21a   :  { %4443 = vtanh.f32 %v1050_v55  ;;  %v1054_v62 = vadd.f32 %v1053_v60, %v338_v49  ;;  %v1055_v63 = vpop.f32.mrb[3].mxu1  ;;  %v1098_v0 = vpop.f32.mrb[7].mxu0  ;;  %v1097_v1 = vadd.f32 %v1096_v61, %v346_v50  ;;  %v4159_v49 = vld [vmem:[#allocation7 + $0x2e4] ss:$16 sps:$4 sm:$0xff]   ;;  %v4162_v50 = vld [vmem:[#allocation7 + $0x2ec] ss:$16 sps:$4 sm:$0xff]  }
 0x21b   :  { %4445 = vtanh.f32 %v1093_v40  ;;  %v1056_v2 = vadd.f32 %v1055_v63, %v342_v51  ;;  %v1099_v3 = vadd.f32 %v1098_v0, %v350_v52  ;;  %v4157_v51 = vld [vmem:[#allocation7 + $0x2e0] ss:$16 sps:$4 sm:$0xff]   ;;  %v4160_v52 = vld [vmem:[#allocation7 + $0x2e8] ss:$16 sps:$4 sm:$0xff]   ;;  %v4177_v60 = vld [vmem:[#allocation7 + $0x344] ss:$16 sps:$4 sm:$0xff]  }
 0x21c   :  { %4447 = vtanh.f32 %v1052_v58  ;;  %v4163_v55 = vld [vmem:[#allocation7 + $0x300] ss:$16 sps:$4 sm:$0xff]   ;;  %v4166_v40 = vld [vmem:[#allocation7 + $0x308] ss:$16 sps:$4 sm:$0xff]   ;;  %v4180_v61 = vld [vmem:[#allocation7 + $0x34c] ss:$16 sps:$4 sm:$0xff]  }
 0x21d   :  { %4449 = vtanh.f32 %v1095_v59  ;;  %v4169_v58 = vld [vmem:[#allocation7 + $0x320] ss:$16 sps:$4 sm:$0xff]   ;;  %v4172_v59 = vld [vmem:[#allocation7 + $0x328] ss:$16 sps:$4 sm:$0xff]   ;;  %v361_v63 = vsub.s32 6, %v4730_v21  ;;  %v357_v0 = vsub.s32 5, %v4730_v21 }
 0x21e   :  { %4451 = vtanh.f32 %v1054_v62  ;;  %v353_v62 = vsub.s32 4, %v4730_v21 }
 0x21f   :  { %4453 = vtanh.f32 %v1097_v1  ;;  %v365_v1 = vsub.s32 7, %v4730_v21 }
 0x220   :  { %4455 = vtanh.f32 %v1056_v2  ;;  %v4175_v2 = vld [vmem:[#allocation7 + $0x340] ss:$16 sps:$4 sm:$0xff]  }
 0x221   :  { %4457 = vtanh.f32 %v1099_v3  ;;  %v4178_v3 = vld [vmem:[#allocation7 + $0x348] ss:$16 sps:$4 sm:$0xff]  }
 0x224   :  { %v4444_v4 = vpop.eup %4443 }
 0x225   :  { %v4446_v5 = vpop.eup %4445 }
 0x226   :  { %v4448_v6 = vpop.eup %4447 }
 0x227   :  { %v4450_v7 = vpop.eup %4449 }
 0x228   :  { %v4452_v8 = vpop.eup %4451 }
 0x229   :  { %v4454_v9 = vpop.eup %4453  ;;  %v1203_v10 = vpack.c.bf16 %v4452_v8, %v4444_v4  ;;  %v354_v4 = vrot.slane %v4753_v47, %v353_v62  ;;  %v358_v8 = vrot.slane %v4753_v47, %v357_v0  ;;  %v4211_v62 = vld [vmem:[#allocation7 + $0x400] ss:$16 sps:$4 sm:$0xff]   ;;  %v4214_v0 = vld [vmem:[#allocation7 + $0x408] ss:$16 sps:$4 sm:$0xff]  }
 0x22a   :  { %v4456_v11 = vpop.eup %4455  ;;  %v4766_v12 = vpack.c.bf16 %v4454_v9, %v4446_v5  ;;  %v362_v5 = vrot.slane %v4753_v47, %v361_v63  ;;  %v366_v9 = vrot.slane %v4753_v47, %v365_v1 }
 0x22b   :  { %v4458_v13 = vpop.eup %4457  ;;  %v1204_v14 = vpack.c.bf16 %v4456_v11, %v4448_v6  ;;  %v4183_v6 = vld [vmem:[#allocation7 + $0x364] ss:$16 sps:$4 sm:$0xff]  }
 0x22c   :  { %v1206_v17 = vpack.c.bf16 %v4458_v13, %v4450_v7  ;;  %v4186_v7 = vld [vmem:[#allocation7 + $0x36c] ss:$16 sps:$4 sm:$0xff]   ;;  %v4181_v13 = vld [vmem:[#allocation7 + $0x360] ss:$16 sps:$4 sm:$0xff]  }
 0x22d   :  { %2801 = vmatprep.mubr.bf16.mxu1 %v1204_v14  ;;  %2973 = vmatprep.mubr.bf16.mxu0 %v1204_v14  ;;  %v4184_v14 = vld [vmem:[#allocation7 + $0x368] ss:$16 sps:$4 sm:$0xff]  }
 0x22e   :  { %2802 = vmatmul.mubr.bf16.vlgmr.msra.gmra.mrb[8].mxu1 %v1203_v10  ;;  %2974 = vmatmul.mubr.bf16.vlgmr.msra.gmra.mrb[12].mxu0 %v1203_v10 }
 0x22f   :  { %2813 = vmatpush1.bf16.msra.mxu1 %v4115_v15  ;;  %2985 = vmatpush1.bf16.msra.mxu0 %v4118_v16 }
 0x230   :  { %2844 = vmatprep.mubr.bf16.mxu1 %v1206_v17  ;;  %3016 = vmatprep.mubr.bf16.mxu0 %v1206_v17 }
 0x231   :  { %2814 = vmatprep.subr.bf16.mxu1 %v4123_v18  ;;  %2986 = vmatprep.subr.bf16.mxu0 %v4126_v19  ;;  %v4189_v19 = vld [vmem:[#allocation7 + $0x384] ss:$16 sps:$4 sm:$0xff]  }
 0x233   :  { %2815 = vmatpush1.bf16.msra.mxu1 %v4121_v20  ;;  %2987 = vmatpush1.bf16.msra.mxu0 %v4124_v23  ;;  %v4192_v20 = vld [vmem:[#allocation7 + $0x38c] ss:$16 sps:$4 sm:$0xff]  }
 0x234   :  { %2816 = vmatprep.subr.bf16.mxu1 %v4129_v25  ;;  %2988 = vmatprep.subr.bf16.mxu0 %v4132_v26 }
 0x237   :  { %2817 = vmatpush1.bf16.msra.mxu1 %v4127_v27  ;;  %2989 = vmatpush1.bf16.msra.mxu0 %v4130_v28 }
 0x238   :  { %2818 = vmatprep.subr.bf16.mxu1 %v4135_v29  ;;  %2990 = vmatprep.subr.bf16.mxu0 %v4138_v30 }
 0x23b   :  { %2819 = vmatpush1.bf16.msra.mxu1 %v4133_v31  ;;  %2991 = vmatpush1.bf16.msra.mxu0 %v4136_v32  ;;  %v4187_v31 = vld [vmem:[#allocation7 + $0x380] ss:$16 sps:$4 sm:$0xff]   ;;  %v4190_v32 = vld [vmem:[#allocation7 + $0x388] ss:$16 sps:$4 sm:$0xff]  }
 0x23c   :  { %2820 = vmatprep.subr.bf16.mxu1 %v4141_v33  ;;  %2992 = vmatprep.subr.bf16.mxu0 %v4144_v34  ;;  %v4195_v34 = vld [vmem:[#allocation7 + $0x3a4] ss:$16 sps:$4 sm:$0xff]  }
 0x23f   :  { %2821 = vmatpush1.bf16.msra.mxu1 %v4139_v35  ;;  %2993 = vmatpush1.bf16.msra.mxu0 %v4142_v36  ;;  %v4198_v35 = vld [vmem:[#allocation7 + $0x3ac] ss:$16 sps:$4 sm:$0xff]  }
 0x240   :  { %2822 = vmatprep.subr.bf16.mxu1 %v4147_v37  ;;  %2994 = vmatprep.subr.bf16.mxu0 %v4150_v38  ;;  %v4193_v37 = vld [vmem:[#allocation7 + $0x3a0] ss:$16 sps:$4 sm:$0xff]   ;;  %v4196_v38 = vld [vmem:[#allocation7 + $0x3a8] ss:$16 sps:$4 sm:$0xff]  }
 0x243   :  { %2823 = vmatpush1.bf16.msra.mxu1 %v4145_v39  ;;  %2995 = vmatpush1.bf16.msra.mxu0 %v4148_v41  ;;  %v4201_v39 = vld [vmem:[#allocation7 + $0x3c4] ss:$16 sps:$4 sm:$0xff]   ;;  %v4204_v41 = vld [vmem:[#allocation7 + $0x3cc] ss:$16 sps:$4 sm:$0xff]  }
 0x244   :  { %2824 = vmatprep.subr.bf16.mxu1 %v4153_v42  ;;  %2996 = vmatprep.subr.bf16.mxu0 %v4156_v43  ;;  %v4199_v42 = vld [vmem:[#allocation7 + $0x3c0] ss:$16 sps:$4 sm:$0xff]   ;;  %v4202_v43 = vld [vmem:[#allocation7 + $0x3c8] ss:$16 sps:$4 sm:$0xff]  }
 0x247   :  { %2825 = vmatpush1.bf16.msra.mxu1 %v4151_v44  ;;  %2997 = vmatpush1.bf16.msra.mxu0 %v4154_v45  ;;  %v4207_v45 = vld [vmem:[#allocation7 + $0x3e4] ss:$16 sps:$4 sm:$0xff]  }
 0x248   :  { %2826 = vmatprep.subr.bf16.mxu1 %v4159_v49  ;;  %2998 = vmatprep.subr.bf16.mxu0 %v4162_v50  ;;  %v4210_v49 = vld [vmem:[#allocation7 + $0x3ec] ss:$16 sps:$4 sm:$0xff]  }
 0x24b   :  { %2827 = vmatpush1.bf16.msra.mxu1 %v4157_v51  ;;  %2999 = vmatpush1.bf16.msra.mxu0 %v4160_v52 }
 0x24c   :  { %2828 = vmatprep.subr.bf16.mxu1 %v4165_v53  ;;  %3000 = vmatprep.subr.bf16.mxu0 %v4168_v54  ;;  %v4205_v53 = vld [vmem:[#allocation7 + $0x3e0] ss:$16 sps:$4 sm:$0xff]   ;;  %v4208_v54 = vld [vmem:[#allocation7 + $0x3e8] ss:$16 sps:$4 sm:$0xff]  }
 0x24f   :  { %2829 = vmatpush1.bf16.msra.mxu1 %v4163_v55  ;;  %3001 = vmatpush1.bf16.msra.mxu0 %v4166_v40  ;;  %v4213_v40 = vld [vmem:[#allocation7 + $0x404] ss:$16 sps:$4 sm:$0xff]  }
 0x250   :  { %2830 = vmatprep.subr.bf16.mxu1 %v4171_v56  ;;  %3002 = vmatprep.subr.bf16.mxu0 %v4174_v57  ;;  %v4216_v56 = vld [vmem:[#allocation7 + $0x40c] ss:$16 sps:$4 sm:$0xff]  }
 0x253   :  { %2831 = vmatpush1.bf16.msra.mxu1 %v4169_v58  ;;  %3003 = vmatpush1.bf16.msra.mxu0 %v4172_v59 }
 0x254   :  { %2832 = vmatprep.subr.bf16.mxu1 %v4177_v60  ;;  %3004 = vmatprep.subr.bf16.mxu0 %v4180_v61 }
 0x257   :  { %2833 = vmatpush1.bf16.msra.mxu1 %v4175_v2  ;;  %3005 = vmatpush1.bf16.msra.mxu0 %v4178_v3  ;;  %v1135_v10 = vpop.f32.mrb[4].mxu1  ;;  %v1178_v11 = vpop.f32.mrb[8].mxu0  ;;  %v4219_v2 = vld [vmem:[#allocation7 + $0x424] ss:$16 sps:$4 sm:$0xff]   ;;  %v4222_v3 = vld [vmem:[#allocation7 + $0x42c] ss:$16 sps:$4 sm:$0xff]  }
 0x258   :  { %v1136_v15 = vadd.f32 %v1135_v10, %v354_v4  ;;  %v1179_v16 = vadd.f32 %v1178_v11, %v362_v5  ;;  %2834 = vmatprep.subr.bf16.mxu1 %v4183_v6  ;;  %3006 = vmatprep.subr.bf16.mxu0 %v4186_v7  ;;  %v1137_v17 = vpop.f32.mrb[5].mxu1  ;;  %v1180_v18 = vpop.f32.mrb[9].mxu0  ;;  %v4225_v6 = vld [vmem:[#allocation7 + $0x444] ss:$16 sps:$4 sm:$0xff]   ;;  %v4228_v7 = vld [vmem:[#allocation7 + $0x44c] ss:$16 sps:$4 sm:$0xff]  }
 0x259   :  { %v1138_v23 = vadd.f32 %v1137_v17, %v358_v8  ;;  %v1181_v25 = vadd.f32 %v1180_v18, %v366_v9  ;;  %v1139_v26 = vpop.f32.mrb[6].mxu1  ;;  %v1182_v27 = vpop.f32.mrb[10].mxu0  ;;  %v4231_v10 = vld [vmem:[#allocation7 + $0x464] ss:$16 sps:$4 sm:$0xff]   ;;  %v4234_v11 = vld [vmem:[#allocation7 + $0x46c] ss:$16 sps:$4 sm:$0xff]  }
 0x25a   :  { %4459 = vtanh.f32 %v1136_v15  ;;  %v1140_v47 = vadd.f32 %v1139_v26, %v354_v4  ;;  %v1141_v28 = vpop.f32.mrb[7].mxu1  ;;  %v1184_v29 = vpop.f32.mrb[11].mxu0  ;;  %v1183_v30 = vadd.f32 %v1182_v27, %v362_v5  ;;  %v4217_v4 = vld [vmem:[#allocation7 + $0x420] ss:$16 sps:$4 sm:$0xff]   ;;  %v4220_v5 = vld [vmem:[#allocation7 + $0x428] ss:$16 sps:$4 sm:$0xff]  }
 0x25b   :  { %4461 = vtanh.f32 %v1179_v16  ;;  %2835 = vmatpush1.bf16.msra.mxu1 %v4181_v13  ;;  %3007 = vmatpush1.bf16.msra.mxu0 %v4184_v14  ;;  %v1142_v33 = vadd.f32 %v1141_v28, %v358_v8  ;;  %v1185_v36 = vadd.f32 %v1184_v29, %v366_v9  ;;  %v4223_v8 = vld [vmem:[#allocation7 + $0x440] ss:$16 sps:$4 sm:$0xff]   ;;  %v4226_v9 = vld [vmem:[#allocation7 + $0x448] ss:$16 sps:$4 sm:$0xff]   ;;  %v4237_v14 = vld [vmem:[#allocation7 + $0x484] ss:$16 sps:$4 sm:$0xff]  }
 0x25c   :  { %4463 = vtanh.f32 %v1138_v23  ;;  %2836 = vmatprep.subr.bf16.mxu1 %v4189_v19  ;;  %3008 = vmatprep.subr.bf16.mxu0 %v4192_v20  ;;  %v4232_v13 = vld [vmem:[#allocation7 + $0x468] ss:$16 sps:$4 sm:$0xff]   ;;  %v4240_v15 = vld [vmem:[#allocation7 + $0x48c] ss:$16 sps:$4 sm:$0xff]   ;;  %v4235_v16 = vld [vmem:[#allocation7 + $0x480] ss:$16 sps:$4 sm:$0xff]  }
 0x25d   :  { %4465 = vtanh.f32 %v1181_v25  ;;  %v4238_v17 = vld [vmem:[#allocation7 + $0x488] ss:$16 sps:$4 sm:$0xff]   ;;  %v4243_v18 = vld [vmem:[#allocation7 + $0x4a4] ss:$16 sps:$4 sm:$0xff]   ;;  %v4246_v19 = vld [vmem:[#allocation7 + $0x4ac] ss:$16 sps:$4 sm:$0xff]  }
 0x25e   :  { %4467 = vtanh.f32 %v1140_v47  ;;  %v4241_v20 = vld [vmem:[#allocation7 + $0x4a0] ss:$16 sps:$4 sm:$0xff]   ;;  %v4244_v23 = vld [vmem:[#allocation7 + $0x4a8] ss:$16 sps:$4 sm:$0xff]   ;;  %v4249_v25 = vld [vmem:[#allocation7 + $0x4c4] ss:$16 sps:$4 sm:$0xff]  }
 0x25f   :  { %4469 = vtanh.f32 %v1183_v30  ;;  %2837 = vmatpush1.bf16.msra.mxu1 %v4187_v31  ;;  %3009 = vmatpush1.bf16.msra.mxu0 %v4190_v32  ;;  %v4252_v26 = vld [vmem:[#allocation7 + $0x4cc] ss:$16 sps:$4 sm:$0xff]   ;;  %v4247_v27 = vld [vmem:[#allocation7 + $0x4c0] ss:$16 sps:$4 sm:$0xff]   ;;  %v4250_v47 = vld [vmem:[#allocation7 + $0x4c8] ss:$16 sps:$4 sm:$0xff]  }
 0x260   :  { %4471 = vtanh.f32 %v1142_v33  ;;  %2838 = vmatprep.subr.bf16.mxu1 %v4195_v34  ;;  %3010 = vmatprep.subr.bf16.mxu0 %v4198_v35  ;;  %v4255_v28 = vld [vmem:[#allocation7 + $0x4e4] ss:$16 sps:$4 sm:$0xff]   ;;  %v4258_v29 = vld [vmem:[#allocation7 + $0x4ec] ss:$16 sps:$4 sm:$0xff]   ;;  %v4253_v30 = vld [vmem:[#allocation7 + $0x4e0] ss:$16 sps:$4 sm:$0xff]  }
 0x261   :  { %4473 = vtanh.f32 %v1185_v36  ;;  %v4256_v31 = vld [vmem:[#allocation7 + $0x4e8] ss:$16 sps:$4 sm:$0xff]   ;;  %v4261_v32 = vld [vmem:[#allocation7 + $0x504] ss:$16 sps:$4 sm:$0xff]   ;;  %v4264_v33 = vld [vmem:[#allocation7 + $0x50c] ss:$16 sps:$4 sm:$0xff]  }
 0x262   :  { %v4259_v34 = vld [vmem:[#allocation7 + $0x500] ss:$16 sps:$4 sm:$0xff]   ;;  %v4262_v35 = vld [vmem:[#allocation7 + $0x508] ss:$16 sps:$4 sm:$0xff]   ;;  %v4267_v36 = vld [vmem:[#allocation7 + $0x524] ss:$16 sps:$4 sm:$0xff]  }
 0x263   :  { %2839 = vmatpush1.bf16.msra.mxu1 %v4193_v37  ;;  %3011 = vmatpush1.bf16.msra.mxu0 %v4196_v38  ;;  %v4270_v37 = vld [vmem:[#allocation7 + $0x52c] ss:$16 sps:$4 sm:$0xff]   ;;  %v4265_v38 = vld [vmem:[#allocation7 + $0x520] ss:$16 sps:$4 sm:$0xff]  }
 0x264   :  { %v4460_v44 = vpop.eup %4459  ;;  %2840 = vmatprep.subr.bf16.mxu1 %v4201_v39  ;;  %3012 = vmatprep.subr.bf16.mxu0 %v4204_v41  ;;  %v4268_v39 = vld [vmem:[#allocation7 + $0x528] ss:$16 sps:$4 sm:$0xff]   ;;  %v4273_v41 = vld [vmem:[#allocation7 + $0x544] ss:$16 sps:$4 sm:$0xff]  }
 0x265   :  { %v4462_v50 = vpop.eup %4461 }
 0x266   :  { %v4464_v51 = vpop.eup %4463 }
 0x267   :  { %v4466_v52 = vpop.eup %4465  ;;  %2841 = vmatpush1.bf16.msra.mxu1 %v4199_v42  ;;  %3013 = vmatpush1.bf16.msra.mxu0 %v4202_v43  ;;  %v4276_v42 = vld [vmem:[#allocation7 + $0x54c] ss:$16 sps:$4 sm:$0xff]   ;;  %v4271_v43 = vld [vmem:[#allocation7 + $0x540] ss:$16 sps:$4 sm:$0xff]  }
 0x268   :  { %v4468_v55 = vpop.eup %4467  ;;  %2842 = vmatprep.subr.bf16.mxu1 %v4207_v45  ;;  %3014 = vmatprep.subr.bf16.mxu0 %v4210_v49  ;;  %v4279_v45 = vld [vmem:[#allocation7 + $0x564] ss:$16 sps:$4 sm:$0xff]   ;;  %v4282_v49 = vld [vmem:[#allocation7 + $0x56c] ss:$16 sps:$4 sm:$0xff]  }
 0x269   :  { %v4470_v57 = vpop.eup %4469  ;;  %v4776_v58 = vpack.c.bf16 %v4468_v55, %v4460_v44  ;;  %v4274_v44 = vld [vmem:[#allocation7 + $0x548] ss:$16 sps:$4 sm:$0xff]  }
 0x26a   :  { %v4472_v59 = vpop.eup %4471  ;;  %v4778_v60 = vpack.c.bf16 %v4470_v57, %v4462_v50  ;;  %v4277_v50 = vld [vmem:[#allocation7 + $0x560] ss:$16 sps:$4 sm:$0xff]   ;;  %v4286_v55 = vld [vmem:[#allocation7 + $0x588] ss:$16 sps:$4 sm:$0xff]  }
 0x26b   :  { %v4474_v61 = vpop.eup %4473  ;;  %2843 = vmatpush1.bf16.msra.mxu1 %v4205_v53  ;;  %3015 = vmatpush1.bf16.msra.mxu0 %v4208_v54  ;;  %v1208_v63 = vpack.c.bf16 %v4472_v59, %v4464_v51  ;;  %v4280_v51 = vld [vmem:[#allocation7 + $0x568] ss:$16 sps:$4 sm:$0xff]   ;;  %v4288_v53 = vld [vmem:[#allocation7 + $0x58c] ss:$16 sps:$4 sm:$0xff]   ;;  %v4283_v54 = vld [vmem:[#allocation7 + $0x580] ss:$16 sps:$4 sm:$0xff]  }
 0x26c   :  { %2855 = vmatprep.subr.bf16.mxu1 %v4213_v40  ;;  %3027 = vmatprep.subr.bf16.mxu0 %v4216_v56  ;;  %v4780_v1 = vpack.c.bf16 %v4474_v61, %v4466_v52  ;;  %v4285_v52 = vld [vmem:[#allocation7 + $0x584] ss:$16 sps:$4 sm:$0xff]   ;;  %v4294_v56 = vld [vmem:[#allocation7 + $0x5ac] ss:$16 sps:$4 sm:$0xff]   ;;  %v4289_v57 = vld [vmem:[#allocation7 + $0x5a0] ss:$16 sps:$4 sm:$0xff]  }
 0x26d   :  { %v4291_v40 = vld [vmem:[#allocation7 + $0x5a4] ss:$16 sps:$4 sm:$0xff]   ;;  %v4292_v59 = vld [vmem:[#allocation7 + $0x5a8] ss:$16 sps:$4 sm:$0xff]  }
 0x26e   :  { %2845 = vmatmul.mubr.bf16.vlgmr.msra.gmra.mrb[8].mxu1 %v4766_v12  ;;  %3017 = vmatmul.mubr.bf16.vlgmr.msra.gmra.mrb[12].mxu0 %v4766_v12  ;;  %v4229_v12 = vld [vmem:[#allocation7 + $0x460] ss:$16 sps:$4 sm:$0xff]   ;;  %v4297_v61 = vld [vmem:[#allocation7 + $0x5c4] ss:$16 sps:$4 sm:$0xff]  }
 0x26f   :  { %2856 = vmatpush1.bf16.msra.mxu1 %v4211_v62  ;;  %2887 = vmatprep.mubr.bf16.mxu1 %v1208_v63  ;;  %v4300_v62 = vld [vmem:[#allocation7 + $0x5cc] ss:$16 sps:$4 sm:$0xff]  }
 0x270   :  { %3028 = vmatpush1.bf16.msra.mxu0 %v4214_v0  ;;  %3059 = vmatprep.mubr.bf16.mxu0 %v1208_v63  ;;  %v4295_v63 = vld [vmem:[#allocation7 + $0x5c0] ss:$16 sps:$4 sm:$0xff]   ;;  %v4298_v0 = vld [vmem:[#allocation7 + $0x5c8] ss:$16 sps:$4 sm:$0xff]  }
 0x271   :  { %2857 = vmatprep.subr.bf16.mxu1 %v4219_v2  ;;  %3029 = vmatprep.subr.bf16.mxu0 %v4222_v3  ;;  %v4303_v2 = vld [vmem:[#allocation7 + $0x5e4] ss:$16 sps:$4 sm:$0xff]   ;;  %v4306_v3 = vld [vmem:[#allocation7 + $0x5ec] ss:$16 sps:$4 sm:$0xff]  }
 0x273   :  { %2858 = vmatpush1.bf16.msra.mxu1 %v4217_v4  ;;  %v4301_v4 = vld [vmem:[#allocation7 + $0x5e0] ss:$16 sps:$4 sm:$0xff]  }
 0x274   :  { %3030 = vmatpush1.bf16.msra.mxu0 %v4220_v5  ;;  %2859 = vmatprep.subr.bf16.mxu1 %v4225_v6  ;;  %v4304_v5 = vld [vmem:[#allocation7 + $0x5e8] ss:$16 sps:$4 sm:$0xff]   ;;  %v4309_v6 = vld [vmem:[#allocation7 + $0x604] ss:$16 sps:$4 sm:$0xff]  }
 0x275   :  { %3031 = vmatprep.subr.bf16.mxu0 %v4228_v7  ;;  %v4312_v7 = vld [vmem:[#allocation7 + $0x60c] ss:$16 sps:$4 sm:$0xff]  }
 0x277   :  { %2860 = vmatpush1.bf16.msra.mxu1 %v4223_v8  ;;  %v4307_v8 = vld [vmem:[#allocation7 + $0x600] ss:$16 sps:$4 sm:$0xff]  }
 0x278   :  { %3032 = vmatpush1.bf16.msra.mxu0 %v4226_v9  ;;  %2861 = vmatprep.subr.bf16.mxu1 %v4231_v10  ;;  %v4310_v9 = vld [vmem:[#allocation7 + $0x608] ss:$16 sps:$4 sm:$0xff]   ;;  %v4315_v10 = vld [vmem:[#allocation7 + $0x624] ss:$16 sps:$4 sm:$0xff]  }
 0x279   :  { %3033 = vmatprep.subr.bf16.mxu0 %v4234_v11  ;;  %v4318_v11 = vld [vmem:[#allocation7 + $0x62c] ss:$16 sps:$4 sm:$0xff]  }
 0x27b   :  { %2862 = vmatpush1.bf16.msra.mxu1 %v4229_v12  ;;  %v4313_v12 = vld [vmem:[#allocation7 + $0x620] ss:$16 sps:$4 sm:$0xff]  }
 0x27c   :  { %3034 = vmatpush1.bf16.msra.mxu0 %v4232_v13  ;;  %2863 = vmatprep.subr.bf16.mxu1 %v4237_v14  ;;  %v4316_v13 = vld [vmem:[#allocation7 + $0x628] ss:$16 sps:$4 sm:$0xff]   ;;  %v4321_v14 = vld [vmem:[#allocation7 + $0x644] ss:$16 sps:$4 sm:$0xff]  }
 0x27d   :  { %3035 = vmatprep.subr.bf16.mxu0 %v4240_v15  ;;  %v4324_v15 = vld [vmem:[#allocation7 + $0x64c] ss:$16 sps:$4 sm:$0xff]  }
 0x27f   :  { %2864 = vmatpush1.bf16.msra.mxu1 %v4235_v16  ;;  %v4319_v16 = vld [vmem:[#allocation7 + $0x640] ss:$16 sps:$4 sm:$0xff]  }
 0x280   :  { %3036 = vmatpush1.bf16.msra.mxu0 %v4238_v17  ;;  %2865 = vmatprep.subr.bf16.mxu1 %v4243_v18  ;;  %v4322_v17 = vld [vmem:[#allocation7 + $0x648] ss:$16 sps:$4 sm:$0xff]   ;;  %v4327_v18 = vld [vmem:[#allocation7 + $0x664] ss:$16 sps:$4 sm:$0xff]  }
 0x281   :  { %3037 = vmatprep.subr.bf16.mxu0 %v4246_v19  ;;  %v4325_v19 = vld [vmem:[#allocation7 + $0x660] ss:$16 sps:$4 sm:$0xff]  }
 0x283   :  { %2866 = vmatpush1.bf16.msra.mxu1 %v4241_v20  ;;  %v4328_v20 = vld [vmem:[#allocation7 + $0x668] ss:$16 sps:$4 sm:$0xff]  }
 0x284   :  { %3038 = vmatpush1.bf16.msra.mxu0 %v4244_v23  ;;  %2867 = vmatprep.subr.bf16.mxu1 %v4249_v25  ;;  %v4333_v23 = vld [vmem:[#allocation7 + $0x684] ss:$16 sps:$4 sm:$0xff]   ;;  %v4336_v25 = vld [vmem:[#allocation7 + $0x68c] ss:$16 sps:$4 sm:$0xff]  }
 0x285   :  { %3039 = vmatprep.subr.bf16.mxu0 %v4252_v26  ;;  %v4334_v26 = vld [vmem:[#allocation7 + $0x688] ss:$16 sps:$4 sm:$0xff]  }
 0x287   :  { %2868 = vmatpush1.bf16.msra.mxu1 %v4247_v27  ;;  %v4339_v27 = vld [vmem:[#allocation7 + $0x6a4] ss:$16 sps:$4 sm:$0xff]  }
 0x288   :  { %3040 = vmatpush1.bf16.msra.mxu0 %v4250_v47  ;;  %2869 = vmatprep.subr.bf16.mxu1 %v4255_v28  ;;  %v4342_v47 = vld [vmem:[#allocation7 + $0x6ac] ss:$16 sps:$4 sm:$0xff]   ;;  %v4337_v28 = vld [vmem:[#allocation7 + $0x6a0] ss:$16 sps:$4 sm:$0xff]  }
 0x289   :  { %3041 = vmatprep.subr.bf16.mxu0 %v4258_v29  ;;  %v4340_v29 = vld [vmem:[#allocation7 + $0x6a8] ss:$16 sps:$4 sm:$0xff]  }
 0x28b   :  { %2870 = vmatpush1.bf16.msra.mxu1 %v4253_v30  ;;  %v4345_v30 = vld [vmem:[#allocation7 + $0x6c4] ss:$16 sps:$4 sm:$0xff]  }
 0x28c   :  { %3042 = vmatpush1.bf16.msra.mxu0 %v4256_v31  ;;  %2871 = vmatprep.subr.bf16.mxu1 %v4261_v32  ;;  %v4348_v31 = vld [vmem:[#allocation7 + $0x6cc] ss:$16 sps:$4 sm:$0xff]   ;;  %v4343_v32 = vld [vmem:[#allocation7 + $0x6c0] ss:$16 sps:$4 sm:$0xff]  }
 0x28d   :  { %3043 = vmatprep.subr.bf16.mxu0 %v4264_v33  ;;  %v4346_v33 = vld [vmem:[#allocation7 + $0x6c8] ss:$16 sps:$4 sm:$0xff]  }
 0x28f   :  { %2872 = vmatpush1.bf16.msra.mxu1 %v4259_v34  ;;  %v4351_v34 = vld [vmem:[#allocation7 + $0x6e4] ss:$16 sps:$4 sm:$0xff]  }
 0x290   :  { %3044 = vmatpush1.bf16.msra.mxu0 %v4262_v35  ;;  %2873 = vmatprep.subr.bf16.mxu1 %v4267_v36  ;;  %v4354_v35 = vld [vmem:[#allocation7 + $0x6ec] ss:$16 sps:$4 sm:$0xff]   ;;  %v4349_v36 = vld [vmem:[#allocation7 + $0x6e0] ss:$16 sps:$4 sm:$0xff]  }
 0x291   :  { %3045 = vmatprep.subr.bf16.mxu0 %v4270_v37  ;;  %v4352_v37 = vld [vmem:[#allocation7 + $0x6e8] ss:$16 sps:$4 sm:$0xff]  }
 0x293   :  { %2874 = vmatpush1.bf16.msra.mxu1 %v4265_v38  ;;  %v4357_v38 = vld [vmem:[#allocation7 + $0x704] ss:$16 sps:$4 sm:$0xff]  }
 0x294   :  { %3046 = vmatpush1.bf16.msra.mxu0 %v4268_v39  ;;  %2875 = vmatprep.subr.bf16.mxu1 %v4273_v41  ;;  %v4360_v39 = vld [vmem:[#allocation7 + $0x70c] ss:$16 sps:$4 sm:$0xff]   ;;  %v4355_v41 = vld [vmem:[#allocation7 + $0x700] ss:$16 sps:$4 sm:$0xff]  }
 0x295   :  { %3047 = vmatprep.subr.bf16.mxu0 %v4276_v42  ;;  %v4358_v42 = vld [vmem:[#allocation7 + $0x708] ss:$16 sps:$4 sm:$0xff]  }
 0x297   :  { %2876 = vmatpush1.bf16.msra.mxu1 %v4271_v43  ;;  %v4363_v43 = vld [vmem:[#allocation7 + $0x724] ss:$16 sps:$4 sm:$0xff]  }
 0x298   :  { %3048 = vmatpush1.bf16.msra.mxu0 %v4274_v44  ;;  %2877 = vmatprep.subr.bf16.mxu1 %v4279_v45  ;;  %v4366_v44 = vld [vmem:[#allocation7 + $0x72c] ss:$16 sps:$4 sm:$0xff]   ;;  %v4361_v45 = vld [vmem:[#allocation7 + $0x720] ss:$16 sps:$4 sm:$0xff]  }
 0x299   :  { %3049 = vmatprep.subr.bf16.mxu0 %v4282_v49  ;;  %v4364_v49 = vld [vmem:[#allocation7 + $0x728] ss:$16 sps:$4 sm:$0xff]  }
 0x29b   :  { %2878 = vmatpush1.bf16.msra.mxu1 %v4277_v50  ;;  %v4369_v50 = vld [vmem:[#allocation7 + $0x744] ss:$16 sps:$4 sm:$0xff]  }
 0x29c   :  { %3050 = vmatpush1.bf16.msra.mxu0 %v4280_v51  ;;  %2879 = vmatprep.subr.bf16.mxu1 %v4285_v52  ;;  %v4372_v51 = vld [vmem:[#allocation7 + $0x74c] ss:$16 sps:$4 sm:$0xff]   ;;  %v4367_v52 = vld [vmem:[#allocation7 + $0x740] ss:$16 sps:$4 sm:$0xff]  }
 0x29d   :  { %3051 = vmatprep.subr.bf16.mxu0 %v4288_v53  ;;  %v4370_v53 = vld [vmem:[#allocation7 + $0x748] ss:$16 sps:$4 sm:$0xff]  }
 0x29f   :  { %2880 = vmatpush1.bf16.msra.mxu1 %v4283_v54  ;;  %v4375_v54 = vld [vmem:[#allocation7 + $0x764] ss:$16 sps:$4 sm:$0xff]  }
 0x2a0   :  { %3052 = vmatpush1.bf16.msra.mxu0 %v4286_v55  ;;  %2881 = vmatprep.subr.bf16.mxu1 %v4291_v40  ;;  %v4378_v55 = vld [vmem:[#allocation7 + $0x76c] ss:$16 sps:$4 sm:$0xff]   ;;  %v4373_v40 = vld [vmem:[#allocation7 + $0x760] ss:$16 sps:$4 sm:$0xff]  }
 0x2a1   :  { %3053 = vmatprep.subr.bf16.mxu0 %v4294_v56  ;;  %v4376_v56 = vld [vmem:[#allocation7 + $0x768] ss:$16 sps:$4 sm:$0xff]  }
 0x2a3   :  { %2882 = vmatpush1.bf16.msra.mxu1 %v4289_v57  ;;  %v4381_v57 = vld [vmem:[#allocation7 + $0x784] ss:$16 sps:$4 sm:$0xff]  }
 0x2a4   :  { %3054 = vmatpush1.bf16.msra.mxu0 %v4292_v59  ;;  %2883 = vmatprep.subr.bf16.mxu1 %v4297_v61  ;;  %v4384_v59 = vld [vmem:[#allocation7 + $0x78c] ss:$16 sps:$4 sm:$0xff]   ;;  %v4379_v61 = vld [vmem:[#allocation7 + $0x780] ss:$16 sps:$4 sm:$0xff]  }
 0x2a5   :  { %3055 = vmatprep.subr.bf16.mxu0 %v4300_v62  ;;  %v4382_v62 = vld [vmem:[#allocation7 + $0x788] ss:$16 sps:$4 sm:$0xff]  }
 0x2a7   :  { %2884 = vmatpush1.bf16.msra.mxu1 %v4295_v63  ;;  %v4387_v63 = vld [vmem:[#allocation7 + $0x7a4] ss:$16 sps:$4 sm:$0xff]  }
 0x2a8   :  { %3056 = vmatpush1.bf16.msra.mxu0 %v4298_v0  ;;  %2885 = vmatprep.subr.bf16.mxu1 %v4303_v2  ;;  %v4390_v0 = vld [vmem:[#allocation7 + $0x7ac] ss:$16 sps:$4 sm:$0xff]   ;;  %v4385_v2 = vld [vmem:[#allocation7 + $0x7a0] ss:$16 sps:$4 sm:$0xff]  }
 0x2a9   :  { %3057 = vmatprep.subr.bf16.mxu0 %v4306_v3  ;;  %v4388_v3 = vld [vmem:[#allocation7 + $0x7a8] ss:$16 sps:$4 sm:$0xff]  }
 0x2ab   :  { %2886 = vmatpush1.bf16.msra.mxu1 %v4301_v4  ;;  %v4393_v4 = vld [vmem:[#allocation7 + $0x7c4] ss:$16 sps:$4 sm:$0xff]  }
 0x2ac   :  { %3058 = vmatpush1.bf16.msra.mxu0 %v4304_v5  ;;  %2898 = vmatprep.subr.bf16.mxu1 %v4309_v6  ;;  %v4396_v5 = vld [vmem:[#allocation7 + $0x7cc] ss:$16 sps:$4 sm:$0xff]   ;;  %v4391_v6 = vld [vmem:[#allocation7 + $0x7c0] ss:$16 sps:$4 sm:$0xff]  }
 0x2ad   :  { %3070 = vmatprep.subr.bf16.mxu0 %v4312_v7  ;;  %v4394_v7 = vld [vmem:[#allocation7 + $0x7c8] ss:$16 sps:$4 sm:$0xff]  }
 0x2ae   :  { %2888 = vmatmul.mubr.bf16.vlgmr.msra.gmra.mrb[8].mxu1 %v4776_v58 }
 0x2af   :  { %3060 = vmatmul.mubr.bf16.vlgmr.msra.gmra.mrb[12].mxu0 %v4776_v58  ;;  %2899 = vmatpush1.bf16.msra.mxu1 %v4307_v8  ;;  %v4330_v58 = vld [vmem:[#allocation7 + $0x66c] ss:$16 sps:$4 sm:$0xff]   ;;  %v4399_v8 = vld [vmem:[#allocation7 + $0x7e4] ss:$16 sps:$4 sm:$0xff]  }
 0x2b0   :  { %2930 = vmatprep.mubr.bf16.mxu1 %v4780_v1  ;;  %3071 = vmatpush1.bf16.msra.mxu0 %v4310_v9  ;;  %v4402_v9 = vld [vmem:[#allocation7 + $0x7ec] ss:$16 sps:$4 sm:$0xff]  }
 0x2b1   :  { %3102 = vmatprep.mubr.bf16.mxu0 %v4780_v1  ;;  %2900 = vmatprep.subr.bf16.mxu1 %v4315_v10  ;;  %v4331_v1 = vld [vmem:[#allocation7 + $0x680] ss:$16 sps:$4 sm:$0xff]  }
 0x2b2   :  { %3072 = vmatprep.subr.bf16.mxu0 %v4318_v11  ;;  %v4397_v10 = vld [vmem:[#allocation7 + $0x7e0] ss:$16 sps:$4 sm:$0xff]   ;;  %v4400_v11 = vld [vmem:[#allocation7 + $0x7e8] ss:$16 sps:$4 sm:$0xff]  }
 0x2b3   :  { %2901 = vmatpush1.bf16.msra.mxu1 %v4313_v12  ;;  %v4403_v12 = vld [vmem:[#allocation8 + $0x40] sm:$0xff]  }
 0x2b4   :  { %3073 = vmatpush1.bf16.msra.mxu0 %v4316_v13  ;;  %2902 = vmatprep.subr.bf16.mxu1 %v4321_v14  ;;  %v4404_v13 = vld [vmem:[#allocation8 + $0xc0] sm:$0xff]  }
 0x2b5   :  { %3074 = vmatprep.subr.bf16.mxu0 %v4324_v15  ;;  %v4405_v14 = vld [vmem:[#allocation8] sm:$0xff]  }
 0x2b6   :  { %v4406_v15 = vld [vmem:[#allocation8 + $0x80] sm:$0xff]  }
 0x2b7   :  { %2903 = vmatpush1.bf16.msra.mxu1 %v4319_v16  ;;  %v4407_v16 = vld [vmem:[#allocation8 + $0x48] sm:$0xff]  }
 0x2b8   :  { %3075 = vmatpush1.bf16.msra.mxu0 %v4322_v17  ;;  %2904 = vmatprep.subr.bf16.mxu1 %v4327_v18  ;;  %v4408_v17 = vld [vmem:[#allocation8 + $0xc8] sm:$0xff]  }
 0x2b9   :  { %3076 = vmatprep.subr.bf16.mxu0 %v4330_v58  ;;  %v4409_v18 = vld [vmem:[#allocation8 + $0x8] sm:$0xff]  }
 0x2ba   :  { %v4410_v58 = vld [vmem:[#allocation8 + $0x88] sm:$0xff]  }
 0x2bb   :  { %2905 = vmatpush1.bf16.msra.mxu1 %v4325_v19  ;;  %v4411_v19 = vld [vmem:[#allocation8 + $0x50] sm:$0xff]  }
 0x2bc   :  { %3077 = vmatpush1.bf16.msra.mxu0 %v4328_v20  ;;  %2906 = vmatprep.subr.bf16.mxu1 %v4333_v23  ;;  %v4412_v20 = vld [vmem:[#allocation8 + $0xd0] sm:$0xff]  }
 0x2bd   :  { %3078 = vmatprep.subr.bf16.mxu0 %v4336_v25  ;;  %v4413_v23 = vld [vmem:[#allocation8 + $0x10] sm:$0xff]  }
 0x2be   :  { %v4414_v25 = vld [vmem:[#allocation8 + $0x90] sm:$0xff]  }
 0x2bf   :  { %2907 = vmatpush1.bf16.msra.mxu1 %v4331_v1  ;;  %v4415_v1 = vld [vmem:[#allocation8 + $0x58] sm:$0xff]  }
 0x2c0   :  { %3079 = vmatpush1.bf16.msra.mxu0 %v4334_v26  ;;  %2908 = vmatprep.subr.bf16.mxu1 %v4339_v27  ;;  %v4416_v26 = vld [vmem:[#allocation8 + $0xd8] sm:$0xff]  }
 0x2c1   :  { %3080 = vmatprep.subr.bf16.mxu0 %v4342_v47  ;;  %v4417_v27 = vld [vmem:[#allocation8 + $0x18] sm:$0xff]   ;;  %v4419_v47 = vld [vmem:[#allocation8 + $0x60] sm:$0xff]  }
 0x2c3   :  { %2909 = vmatpush1.bf16.msra.mxu1 %v4337_v28  ;;  %v4420_v28 = vld [vmem:[#allocation8 + $0xe0] sm:$0xff]  }
 0x2c4   :  { %3081 = vmatpush1.bf16.msra.mxu0 %v4340_v29  ;;  %2910 = vmatprep.subr.bf16.mxu1 %v4345_v30  ;;  %v4421_v29 = vld [vmem:[#allocation8 + $0x20] sm:$0xff]  }
 0x2c5   :  { %3082 = vmatprep.subr.bf16.mxu0 %v4348_v31  ;;  %v4422_v30 = vld [vmem:[#allocation8 + $0xa0] sm:$0xff]   ;;  %v4423_v31 = vld [vmem:[#allocation8 + $0x68] sm:$0xff]  }
 0x2c7   :  { %2911 = vmatpush1.bf16.msra.mxu1 %v4343_v32  ;;  %v4424_v32 = vld [vmem:[#allocation8 + $0xe8] sm:$0xff]  }
 0x2c8   :  { %3083 = vmatpush1.bf16.msra.mxu0 %v4346_v33  ;;  %2912 = vmatprep.subr.bf16.mxu1 %v4351_v34  ;;  %v4425_v33 = vld [vmem:[#allocation8 + $0x28] sm:$0xff]  }
 0x2c9   :  { %3084 = vmatprep.subr.bf16.mxu0 %v4354_v35  ;;  %v4426_v34 = vld [vmem:[#allocation8 + $0xa8] sm:$0xff]   ;;  %v4427_v35 = vld [vmem:[#allocation8 + $0x70] sm:$0xff]  }
 0x2cb   :  { %2913 = vmatpush1.bf16.msra.mxu1 %v4349_v36  ;;  %v4428_v36 = vld [vmem:[#allocation8 + $0xf0] sm:$0xff]  }
 0x2cc   :  { %3085 = vmatpush1.bf16.msra.mxu0 %v4352_v37  ;;  %2914 = vmatprep.subr.bf16.mxu1 %v4357_v38  ;;  %v4429_v37 = vld [vmem:[#allocation8 + $0x30] sm:$0xff]  }
 0x2cd   :  { %3086 = vmatprep.subr.bf16.mxu0 %v4360_v39  ;;  %v4430_v38 = vld [vmem:[#allocation8 + $0xb0] sm:$0xff]   ;;  %v4431_v39 = vld [vmem:[#allocation8 + $0x78] sm:$0xff]  }
 0x2cf   :  { %2915 = vmatpush1.bf16.msra.mxu1 %v4355_v41  ;;  %v4432_v41 = vld [vmem:[#allocation8 + $0xf8] sm:$0xff]  }
 0x2d0   :  { %3087 = vmatpush1.bf16.msra.mxu0 %v4358_v42  ;;  %2916 = vmatprep.subr.bf16.mxu1 %v4363_v43  ;;  %v4433_v42 = vld [vmem:[#allocation8 + $0x38] sm:$0xff]  }
 0x2d1   :  { %3088 = vmatprep.subr.bf16.mxu0 %v4366_v44  ;;  %v4434_v43 = vld [vmem:[#allocation8 + $0xb8] sm:$0xff]   ;;  %v1467_v44 = vld [vmem:[%s4823_s6] sm:$0xf] }
 0x2d3   :  { %2917 = vmatpush1.bf16.msra.mxu1 %v4361_v45  ;;  %v1472_v45 = vrot.slane %v1467_v44, %v4733_v22 }
 0x2d4   :  { %3089 = vmatpush1.bf16.msra.mxu0 %v4364_v49  ;;  %2918 = vmatprep.subr.bf16.mxu1 %v4369_v50  ;;  %v1480_v49 = vrot.slane %v1467_v44, %v345_v46  ;;  %v1476_v50 = vrot.slane %v1467_v44, %v4739_v24 }
 0x2d5   :  { %3090 = vmatprep.subr.bf16.mxu0 %v4372_v51  ;;  %v1484_v51 = vrot.slane %v1467_v44, %v349_v48 }
 0x2d7   :  { %2919 = vmatpush1.bf16.msra.mxu1 %v4367_v52 }
 0x2d8   :  { %3091 = vmatpush1.bf16.msra.mxu0 %v4370_v53  ;;  %2920 = vmatprep.subr.bf16.mxu1 %v4375_v54 }
 0x2d9   :  { %3092 = vmatprep.subr.bf16.mxu0 %v4378_v55 }
 0x2db   :  { %2921 = vmatpush1.bf16.msra.mxu1 %v4373_v40 }
 0x2dc   :  { %3093 = vmatpush1.bf16.msra.mxu0 %v4376_v56  ;;  %2922 = vmatprep.subr.bf16.mxu1 %v4381_v57 }
 0x2dd   :  { %3094 = vmatprep.subr.bf16.mxu0 %v4384_v59 }
 0x2df   :  { %2923 = vmatpush1.bf16.msra.mxu1 %v4379_v61 }
 0x2e0   :  { %3095 = vmatpush1.bf16.msra.mxu0 %v4382_v62  ;;  %2924 = vmatprep.subr.bf16.mxu1 %v4387_v63 }
 0x2e1   :  { %3096 = vmatprep.subr.bf16.mxu0 %v4390_v0 }
 0x2e3   :  { %2925 = vmatpush1.bf16.msra.mxu1 %v4385_v2 }
 0x2e4   :  { %3097 = vmatpush1.bf16.msra.mxu0 %v4388_v3  ;;  %2926 = vmatprep.subr.bf16.mxu1 %v4393_v4 }
 0x2e5   :  { %3098 = vmatprep.subr.bf16.mxu0 %v4396_v5 }
 0x2e7   :  { %2927 = vmatpush1.bf16.msra.mxu1 %v4391_v6 }
 0x2e8   :  { %3099 = vmatpush1.bf16.msra.mxu0 %v4394_v7  ;;  %2928 = vmatprep.subr.bf16.mxu1 %v4399_v8 }
 0x2e9   :  { %3100 = vmatprep.subr.bf16.mxu0 %v4402_v9 }
 0x2eb   :  { %2929 = vmatpush1.bf16.msra.mxu1 %v4397_v10 }
 0x2ec   :  { %3101 = vmatpush1.bf16.msra.mxu0 %v4400_v11  ;;  %3917 = vmatprep.subr.bf16.mxu1 %v4403_v12 }
 0x2ed   :  { %3939 = vmatprep.subr.bf16.mxu0 %v4404_v13 }
 0x2ee   :  { %2931 = vmatmul.mubr.bf16.vlgmr.msra.gmra.mrb[8].mxu1 %v4778_v60 }
 0x2ef   :  { %3103 = vmatmul.mubr.bf16.vlgmr.msra.gmra.mrb[12].mxu0 %v4778_v60  ;;  %3918 = vmatpush3.bf16.msra.mxu1 %v4405_v14  ;;  %v4418_v60 = vld [vmem:[#allocation8 + $0x98] sm:$0xff]  }
 0x2f0   :  { %3940 = vmatpush3.bf16.msra.mxu0 %v4406_v15  ;;  %3919 = vmatprep.subr.bf16.mxu1 %v4407_v16  ;;  %v3884_v15 = vld [vmem:[%s4825_s8] ss:$0 sm:$0xff]  ;;  %s4579_s8 = scalar_lea.vmem %s3478_s28, 256 }
 0x2f1   :  { %3941 = vmatprep.subr.bf16.mxu0 %v4408_v17  ;;  %p4580_p4 = scmp.ne.s32.totalorder %s3478_s28, %s4579_s8  ;;  %p4585_p6 = scmp.lt.s32.totalorder %s4579_s8, %s4579_s8 }
 0x2f3   :  { %3920 = vmatpush3.bf16.msra.mxu1 %v4409_v18  ;;  %p4586_p7 = por %p4585_p6, %p4584_p5 }
 0x2f4   :  { %3942 = vmatpush3.bf16.msra.mxu0 %v4410_v58  ;;  %3921 = vmatprep.subr.bf16.mxu1 %v4411_v19 }
 0x2f5   :  { %3943 = vmatprep.subr.bf16.mxu0 %v4412_v20  ;;  %p4587_p8 = pnand %p4586_p7, %p4580_p4 }
 0x2f7   :  { %3922 = vmatpush3.bf16.msra.mxu1 %v4413_v23 }
 0x2f8   :  { %3944 = vmatpush3.bf16.msra.mxu0 %v4414_v25  ;;  %3923 = vmatprep.subr.bf16.mxu1 %v4415_v1 }
 0x2f9   :  { %3945 = vmatprep.subr.bf16.mxu0 %v4416_v26 }
 0x2fb   :  { %3924 = vmatpush3.bf16.msra.mxu1 %v4417_v27 }
 0x2fc   :  { %3946 = vmatpush3.bf16.msra.mxu0 %v4418_v60  ;;  %3925 = vmatprep.subr.bf16.mxu1 %v4419_v47 }
 0x2fd   :  { %3947 = vmatprep.subr.bf16.mxu0 %v4420_v28 }
 0x2ff   :  { %3926 = vmatpush3.bf16.msra.mxu1 %v4421_v29 }
 0x300   :  { %3948 = vmatpush3.bf16.msra.mxu0 %v4422_v30  ;;  %3927 = vmatprep.subr.bf16.mxu1 %v4423_v31 }
 0x301   :  { %3949 = vmatprep.subr.bf16.mxu0 %v4424_v32 }
 0x303   :  { %3928 = vmatpush3.bf16.msra.mxu1 %v4425_v33 }
 0x304   :  { %3950 = vmatpush3.bf16.msra.mxu0 %v4426_v34  ;;  %3929 = vmatprep.subr.bf16.mxu1 %v4427_v35 }
 0x305   :  { %3951 = vmatprep.subr.bf16.mxu0 %v4428_v36 }
 0x307   :  { %3930 = vmatpush3.bf16.msra.mxu1 %v4429_v37 }
 0x308   :  { %3952 = vmatpush3.bf16.msra.mxu0 %v4430_v38  ;;  %3931 = vmatprep.subr.bf16.mxu1 %v4431_v39 }
 0x309   :  { %3953 = vmatprep.subr.bf16.mxu0 %v4432_v41 }
 0x30b   :  { %3932 = vmatpush3.bf16.msra.mxu1 %v4433_v42 }
 0x30c   :  { %3954 = vmatpush3.bf16.msra.mxu0 %v4434_v43 }
 0x3c1   :  { %v2932_v52 = vpop.f32.mrb[8].mxu1 }
 0x3c2   :  { %v3961_v53 = vadd.f32 %v2932_v52, %v1472_v45  ;;  %v3104_v54 = vpop.f32.mrb[12].mxu0  ;;  %v2934_v55 = vpop.f32.mrb[9].mxu1 }
 0x3c3   :  { %v3965_v40 = vadd.f32 %v3104_v54, %v1480_v49  ;;  %v3962_v56 = vadd.f32 %v2934_v55, %v1476_v50  ;;  %v3106_v57 = vpop.f32.mrb[13].mxu0  ;;  %v2936_v59 = vpop.f32.mrb[10].mxu1 }
 0x3c4   :  { %4475 = vtanh.f32 %v3961_v53  ;;  %v3966_v61 = vadd.f32 %v3106_v57, %v1484_v51  ;;  %v3963_v62 = vadd.f32 %v2936_v59, %v1472_v45  ;;  %v3108_v22 = vpop.f32.mrb[14].mxu0  ;;  %v2938_v63 = vpop.f32.mrb[11].mxu1 }
 0x3c5   :  { %4477 = vtanh.f32 %v3965_v40  ;;  %v3967_v46 = vadd.f32 %v3108_v22, %v1480_v49  ;;  %v3110_v0 = vpop.f32.mrb[15].mxu0  ;;  %v3964_v24 = vadd.f32 %v2938_v63, %v1476_v50 }
 0x3c6   :  { %4479 = vtanh.f32 %v3962_v56  ;;  %v3968_v21 = vadd.f32 %v3110_v0, %v1484_v51 }
 0x3c7   :  { %4481 = vtanh.f32 %v3966_v61 }
 0x3c8   :  { %4483 = vtanh.f32 %v3963_v62 }
 0x3c9   :  { %4485 = vtanh.f32 %v3967_v46 }
 0x3ca   :  { %4487 = vtanh.f32 %v3964_v24 }
 0x3cb   :  { %4489 = vtanh.f32 %v3968_v21 }
 0x3ce   :  { %v4476_v48 = vpop.eup %4475 }
 0x3cf   :  { %v4478_v2 = vpop.eup %4477 }
 0x3d0   :  { %v4480_v3 = vpop.eup %4479 }
 0x3d1   :  { %v4482_v4 = vpop.eup %4481 }
 0x3d2   :  { %v4484_v5 = vpop.eup %4483 }
 0x3d3   :  { %v4486_v6 = vpop.eup %4485  ;;  %v3121_v7 = vpack.c.bf16 %v4484_v5, %v4476_v48 }
 0x3d4   :  { %v4488_v8 = vpop.eup %4487  ;;  %v3123_v9 = vpack.c.bf16 %v4486_v6, %v4478_v2 }
 0x3d5   :  { %v4490_v10 = vpop.eup %4489  ;;  %v3122_v11 = vpack.c.bf16 %v4488_v8, %v4480_v3 }
 0x3d6   :  { %v3124_v12 = vpack.c.bf16 %v4490_v10, %v4482_v4 }
 0x3d7   :  { %3420 = vmatprep.mubr.bf16.mxu1 %v3122_v11 }
 0x3d8   :  { %3461 = vmatprep.mubr.bf16.mxu0 %v3124_v12  ;;  %3421 = vmatmul.mubr.bf16.vlgmr.msra.gmra.mrb[12].mxu1 %v3121_v7 }
 0x3d9   :  { %3462 = vmatmul.mubr.bf16.vlgmr.msra.gmra.mrb[16].mxu0 %v3123_v9 }
 0x4ab   :  { %v3933_v13 = vpop.f32.mrb[12].mxu1 }
 0x4ac   :  { %v3955_v14 = vpop.f32.mrb[16].mxu0  ;;  %v3934_v16 = vpop.f32.mrb[13].mxu1 }
 0x4ad   :  { %v3935_v17 = vadd.f32 %v3934_v16, %v3933_v13  ;;  %v3956_v18 = vpop.f32.mrb[17].mxu0  ;;  %v3936_v58 = vpop.f32.mrb[14].mxu1 }
 0x4ae   :  { %v3957_v19 = vadd.f32 %v3956_v18, %v3955_v14  ;;  %v3958_v20 = vpop.f32.mrb[18].mxu0  ;;  %v3937_v23 = vpop.f32.mrb[15].mxu1 }
 0x4af   :  { %v3423_v25 = vadd.f32 %v3935_v17, %v3884_v15  ;;  %v3938_v1 = vadd.f32 %v3937_v23, %v3936_v58  ;;  %v3959_v26 = vpop.f32.mrb[19].mxu0 }
 0x4b0   :  { %v3960_v27 = vadd.f32 %v3959_v26, %v3958_v20 }
 0x4b1   :  { %v3464_v60 = vadd.f32 %v3957_v19, %v3423_v25  ;;  %v3426_v47 = vadd.f32 %v3938_v1, %v3884_v15 }
 0x4b3   :  { %3470 = vst [vmem:[#allocation10] sm:$0xff] %v3464_v60  ;;  %v3467_v28 = vadd.f32 %v3960_v27, %v3426_v47 }
 0x4b5   :  { %3471 = vst [vmem:[#allocation10 + $0x8] sm:$0xff] %v3467_v28 }
 0x4b6   :  { %4590 = shalt.err (!%p4587_p8)
}
 0x4b7   :  { %s4591_s11 = scalar_lea.hbm %s4826_s9, 256 }
 0x4b8   :  { %p4592_p9 = scmp.ne.s32.totalorder %s4826_s9, %s4591_s11  ;;  %p4595_p10 = scmp.lt.u32.totalorder %s4591_s11, %s4826_s9 }
 0x4ba   :  { %p4597_p11 = pnand %p4595_p10, %p4592_p9 }
 0x4bc   :  { %4600 = shalt.err (!%p4597_p11)
}
 0x4bd   :  { %3483 = dma.vmem_to_hbm [thread:$0]  %s3478_s28, 256, %s4826_s9, [#allocation4], %s4613_s3, %s4613_s3, %s4614_s10  }
 0x4be   :  { %4607 = dma.done.wait [#allocation4], 256  }
 0x4bf   :  { %4608 = vsyncadd [#allocation4], 4294967040 }
 0x4c0   :  { %3487 = vsyncpa [#allocation3], 1 }
 0x4c1   :  { %3488 = vsyncpa [#allocation6], 1 }
 0x4c2   :  { %3489 = vsyncpa [#allocation9], 1 }
 0x4c3   :  { %3490 = vsyncpa [#allocation4], 1 }

</bundles_post_ra>
